<compile_context>
chip_gen: v7x
topology: tpu7x:2x2x1
jax: 0.10.0
libtpu: 0.0.40
codegen_flags: <defaults>
</compile_context>

<pallas_src>
import jax
import jax.numpy as jnp
from jax.experimental import pallas as pl
from jax.experimental.pallas import tpu as pltpu

LABEL_DIM = 10
IMG_DIM = 28 * 28                      # 784
IN_DIM = IMG_DIM + LABEL_DIM           # 794
H1, H2, H3, OUT_DIM = 1024, 512, 256, 1
TB_MAX = 256   # fills the 256-wide MXU M dim on v6e/v7x
TN1 = 256      # H1 streamed in 256-column chunks (4 chunks)


def _leaky_relu(x, negative_slope=0.2):
    # maximum(x, a*x) == LeakyReLU(a) for 0 < a < 1; 2 VPU ops instead of 3.
    return jnp.maximum(x, negative_slope * x)


def _disc_kernel(x_ref, lab_ref,
                 w1x_ref, w1l_ref, b1_ref,
                 w2_ref, b2_ref,
                 w3_ref, b3_ref,
                 w4_ref, b4_ref,
                 o_ref, acc_ref):
    """One (batch-tile, H1-chunk) grid step.

    Grid axis 0 (parallel): batch tiles of `tb` rows.
    Grid axis 1 (arbitrary): 256-wide chunks of H1.  Each chunk computes the
    corresponding slice of h1 and accumulates its fc2 partial product into
    `acc_ref` (f32).  fc2 bias/activation, fc3, fc4 and the sigmoid run only
    on the last chunk, after which the output block is written back.
    """
    j = pl.program_id(1)

    @pl.when(j == 0)
    def _():
        acc_ref[...] = jnp.zeros_like(acc_ref)

    x = x_ref[...].astype(jnp.bfloat16)
    lab = lab_ref[...].astype(jnp.bfloat16)

    # fc1, N-chunk j: image part + label part -> no 794-wide concat needed.
    h1 = jnp.dot(x, w1x_ref[...], preferred_element_type=jnp.float32)
    h1 = h1 + jnp.dot(lab, w1l_ref[...], preferred_element_type=jnp.float32)
    h1 = _leaky_relu(h1 + b1_ref[...])

    # fc2 partial product: this H1 chunk is a K-slice of the fc2 matmul.
    acc_ref[...] += jnp.dot(h1.astype(jnp.bfloat16), w2_ref[...],
                            preferred_element_type=jnp.float32)

    @pl.when(j == pl.num_programs(1) - 1)
    def _():
        h2 = _leaky_relu(acc_ref[...] + b2_ref[...])
        h3 = jnp.dot(h2.astype(jnp.bfloat16), w3_ref[...],
                     preferred_element_type=jnp.float32)
        h3 = _leaky_relu(h3 + b3_ref[...])
        # fc4 (256 -> 1): VPU multiply + lane reduction, no N=1 MXU pass.
        z = jnp.sum(h3 * w4_ref[...], axis=-1, keepdims=True) + b4_ref[...]
        o_ref[...] = jax.nn.sigmoid(z)


def _const_spec(shape):
    # Same (full-array) block at every grid step -> resident, DMA'd once.
    return pl.BlockSpec(shape, lambda i, j: (0,) * len(shape))


@jax.jit
def discriminator_forward(x, label, params):
    """x: [B, 1, 28, 28] f32 (NCHW), label: [B, 10] f32 -> [B, 1] f32."""
    w1x, w1l, b1, w2, b2, w3, b3, w4, b4 = params
    B = x.shape[0]
    x_flat = x.reshape(B, IMG_DIM)

    # Batch tile: sublane-aligned, capped at TB_MAX rows.
    tb = min(TB_MAX, ((B + 7) // 8) * 8)
    B_pad = pl.cdiv(B, tb) * tb
    if B_pad != B:
        x_flat = jnp.pad(x_flat, ((0, B_pad - B), (0, 0)))
        label = jnp.pad(label, ((0, B_pad - B), (0, 0)))

    grid = (B_pad // tb, H1 // TN1)

    # Advisory cost for XLA scheduling around the custom call.
    flops = 2 * B_pad * (IMG_DIM * H1 + LABEL_DIM * H1
                         + H1 * H2 + H2 * H3 + H3 * OUT_DIM)
    weight_bytes = (2 * ((IMG_DIM + LABEL_DIM) * H1 + H1 * H2 + H2 * H3)
                    + 4 * (H1 + H2 + 2 * H3 + OUT_DIM))
    bytes_accessed = (weight_bytes
                      + B_pad * (IMG_DIM + LABEL_DIM) * 4
                      + B_pad * OUT_DIM * 4)

    out = pl.pallas_call(
        _disc_kernel,
        out_shape=jax.ShapeDtypeStruct((B_pad, OUT_DIM), jnp.float32),
        grid_spec=pltpu.PrefetchScalarGridSpec(
            num_scalar_prefetch=0,
            grid=grid,
            in_specs=[
                pl.BlockSpec((tb, IMG_DIM), lambda i, j: (i, 0)),     # image rows
                pl.BlockSpec((tb, LABEL_DIM), lambda i, j: (i, 0)),   # label rows
                pl.BlockSpec((IMG_DIM, TN1), lambda i, j: (0, j)),    # W1 img, streamed over H1
                pl.BlockSpec((LABEL_DIM, TN1), lambda i, j: (0, j)),  # W1 lab, streamed
                pl.BlockSpec((1, TN1), lambda i, j: (0, j)),          # b1 chunk
                pl.BlockSpec((TN1, H2), lambda i, j: (j, 0)),         # W2 K-slab, streamed
                _const_spec((1, H2)),       # b2 (resident)
                _const_spec((H2, H3)),      # W3 (bf16, resident)
                _const_spec((1, H3)),       # b3
                _const_spec((1, H3)),       # W4 row (f32, used on VPU)
                _const_spec((1, OUT_DIM)),  # b4
            ],
            out_specs=pl.BlockSpec((tb, OUT_DIM), lambda i, j: (i, 0)),
            scratch_shapes=[pltpu.VMEM((tb, H2), jnp.float32)],
        ),
        compiler_params=pltpu.CompilerParams(
            dimension_semantics=("parallel", "arbitrary"),
            vmem_limit_bytes=32 << 20,  # footprint ~4-5 MiB; plenty of headroom
        ),
        cost_estimate=pl.CostEstimate(
            flops=flops,
            transcendentals=B_pad,
            bytes_accessed=bytes_accessed),
    )(x_flat, label, w1x, w1l, b1, w2, b2, w3, b3, w4, b4)

    return out[:B]


def init_params(key):
    """nn.Linear-style init U(-1/sqrt(fan_in), +1/sqrt(fan_in)).

    Weights are stored pre-transposed [in, out]; fc1 is split into image /
    label slabs; fc1..fc3 weights are cast to bf16; fc4 is kept as an f32
    row-vector for the VPU reduction.  Biases stay f32 (negligible bytes).
    """
    keys = jax.random.split(key, 8)

    def _linear(kw, kb, fan_in, fan_out):
        k = 1.0 / jnp.sqrt(fan_in)
        w = jax.random.uniform(kw, (fan_in, fan_out), minval=-k, maxval=k,
                               dtype=jnp.float32)
        b = jax.random.uniform(kb, (1, fan_out), minval=-k, maxval=k,
                               dtype=jnp.float32)
        return w, b

    w1, b1 = _linear(keys[0], keys[1], IN_DIM, H1)
    w2, b2 = _linear(keys[2], keys[3], H1, H2)
    w3, b3 = _linear(keys[4], keys[5], H2, H3)
    w4, b4 = _linear(keys[6], keys[7], H3, OUT_DIM)

    w1x = w1[:IMG_DIM].astype(jnp.bfloat16)
    w1l = w1[IMG_DIM:].astype(jnp.bfloat16)
    w2 = w2.astype(jnp.bfloat16)
    w3 = w3.astype(jnp.bfloat16)
    w4 = w4.T  # [1, 256] f32
    return (w1x, w1l, b1, w2, b2, w3, b3, w4, b4)


def _reference_forward(x, label, params):
    """Plain-JAX reference using the same bf16 weights / f32 accumulation."""
    w1x, w1l, b1, w2, b2, w3, b3, w4, b4 = params
    xf = x.reshape(x.shape[0], IMG_DIM)
    h = (jnp.dot(xf.astype(jnp.bfloat16), w1x,
                 preferred_element_type=jnp.float32)
         + jnp.dot(label.astype(jnp.bfloat16), w1l,
                   preferred_element_type=jnp.float32))
    h = _leaky_relu(h + b1)
    h = _leaky_relu(jnp.dot(h.astype(jnp.bfloat16), w2,
                            preferred_element_type=jnp.float32) + b2)
    h = _leaky_relu(jnp.dot(h.astype(jnp.bfloat16), w3,
                            preferred_element_type=jnp.float32) + b3)
    z = jnp.sum(h * w4, axis=-1, keepdims=True) + b4
    return jax.nn.sigmoid(z)


if __name__ == "__main__":
    key = jax.random.PRNGKey(0)
    kp, kx, kl = jax.random.split(key, 3)

    params = init_params(kp)

    B = 2
    x = jax.random.normal(kx, (B, 1, 28, 28), dtype=jnp.float32)
    label_ids = jax.random.randint(kl, (B,), 0, LABEL_DIM)
    label = jax.nn.one_hot(label_ids, LABEL_DIM, dtype=jnp.float32)

    out = discriminator_forward(x, label, params)
    out = jax.block_until_ready(out)

    ref = _reference_forward(x, label, params)
    assert out.shape == (B, 1)
    assert jnp.allclose(out, ref, atol=5e-3, rtol=5e-3), "mismatch vs reference"

    print("KERNEL_OK")
</pallas_src>

<mosaic_0001>
module attributes {stable_mosaic.version = 11 : i64} {
  func.func @_disc_kernel(%arg0: i32, %arg1: i32, %arg2: memref<8x784xf32, #tpu.memory_space<vmem>>, %arg3: memref<8x10xf32, #tpu.memory_space<vmem>>, %arg4: memref<784x256xbf16, #tpu.memory_space<vmem>>, %arg5: memref<10x256xbf16, #tpu.memory_space<vmem>>, %arg6: memref<1x256xf32, #tpu.memory_space<vmem>>, %arg7: memref<256x512xbf16, #tpu.memory_space<vmem>>, %arg8: memref<1x512xf32, #tpu.memory_space<vmem>>, %arg9: memref<512x256xbf16, #tpu.memory_space<vmem>>, %arg10: memref<1x256xf32, #tpu.memory_space<vmem>>, %arg11: memref<1x256xf32, #tpu.memory_space<vmem>>, %arg12: memref<1x1xf32, #tpu.memory_space<vmem>>, %arg13: memref<8x1xf32, #tpu.memory_space<vmem>>, %arg14: memref<8x512xf32, #tpu.memory_space<vmem>>) attributes {dimension_semantics = [#tpu.dimension_semantics<parallel>, #tpu.dimension_semantics<arbitrary>], iteration_bounds = array<i64: 1, 4>, scalar_prefetch = 0 : i64, scratch_operands = 1 : i64, tpu.core_type = #tpu.core_type<tc>, window_params = [{transform_indices = @transform_0, window_bounds = array<i64: 8, 784>}, {transform_indices = @transform_1, window_bounds = array<i64: 8, 10>}, {transform_indices = @transform_2, window_bounds = array<i64: 784, 256>}, {transform_indices = @transform_3, window_bounds = array<i64: 10, 256>}, {transform_indices = @transform_4, window_bounds = array<i64: 1, 256>}, {transform_indices = @transform_5, window_bounds = array<i64: 256, 512>}, {pipeline_mode = #tpu.pipeline_mode<synchronous>, transform_indices = @transform_6, window_bounds = array<i64: 1, 512>}, {pipeline_mode = #tpu.pipeline_mode<synchronous>, transform_indices = @transform_7, window_bounds = array<i64: 512, 256>}, {pipeline_mode = #tpu.pipeline_mode<synchronous>, transform_indices = @transform_8, window_bounds = array<i64: 1, 256>}, {pipeline_mode = #tpu.pipeline_mode<synchronous>, transform_indices = @transform_9, window_bounds = array<i64: 1, 256>}, {pipeline_mode = #tpu.pipeline_mode<synchronous>, transform_indices = @transform_10, window_bounds = array<i64: 1, 1>}, {transform_indices = @transform_11, window_bounds = array<i64: 8, 1>}]} {
    %c0_i32 = arith.constant 0 : i32
    %0 = arith.cmpi eq, %arg1, %c0_i32 : i32
    %1 = arith.extui %0 : i1 to i32
    %c0_i32_0 = arith.constant 0 : i32
    %2 = arith.cmpi ne, %1, %c0_i32_0 : i32
    scf.if %2 {
      %cst_20 = arith.constant 0.000000e+00 : f32
      %27 = vector.broadcast %cst_20 : f32 to vector<8x512xf32>
      %c0_21 = arith.constant 0 : index
      %c0_22 = arith.constant 0 : index
      %28 = vector.load %arg14[%c0_21, %c0_22] : memref<8x512xf32, #tpu.memory_space<vmem>>, vector<8x512xf32>
      tpu.vector_store %arg14[%c0_21, %c0_22], %27 {strides = array<i32>} : memref<8x512xf32, #tpu.memory_space<vmem>>, vector<8x512xf32>,
    } else {
    }
    %c0 = arith.constant 0 : index
    %c0_1 = arith.constant 0 : index
    %3 = vector.load %arg2[%c0, %c0_1] : memref<8x784xf32, #tpu.memory_space<vmem>>, vector<8x784xf32>
    %4 = arith.truncf %3 : vector<8x784xf32> to vector<8x784xbf16>
    %c0_2 = arith.constant 0 : index
    %c0_3 = arith.constant 0 : index
    %5 = vector.load %arg3[%c0_2, %c0_3] : memref<8x10xf32, #tpu.memory_space<vmem>>, vector<8x10xf32>
    %6 = arith.truncf %5 : vector<8x10xf32> to vector<8x10xbf16>
    %c0_4 = arith.constant 0 : index
    %c0_5 = arith.constant 0 : index
    %7 = vector.load %arg4[%c0_4, %c0_5] : memref<784x256xbf16, #tpu.memory_space<vmem>>, vector<784x256xbf16>
    %cst = arith.constant dense<0.000000e+00> : vector<8x256xf32>
    %8 = tpu.matmul %4, %7, %cst {dimension_numbers = #tpu.dot_dimension_numbers<[1], [0], [0], [1], [0, 0, 1, 1], [], []>} : vector<8x784xbf16>, vector<784x256xbf16>, vector<8x256xf32> -> vector<8x256xf32>
    %c0_6 = arith.constant 0 : index
    %c0_7 = arith.constant 0 : index
    %9 = vector.load %arg5[%c0_6, %c0_7] : memref<10x256xbf16, #tpu.memory_space<vmem>>, vector<10x256xbf16>
    %cst_8 = arith.constant dense<0.000000e+00> : vector<8x256xf32>
    %10 = tpu.matmul %6, %9, %cst_8 {dimension_numbers = #tpu.dot_dimension_numbers<[1], [0], [0], [1], [0, 0, 1, 1], [], []>} : vector<8x10xbf16>, vector<10x256xbf16>, vector<8x256xf32> -> vector<8x256xf32>
    %11 = arith.addf %8, %10 : vector<8x256xf32>
    %c0_9 = arith.constant 0 : index
    %c0_10 = arith.constant 0 : index
    %12 = vector.load %arg6[%c0_9, %c0_10] : memref<1x256xf32, #tpu.memory_space<vmem>>, vector<1x256xf32>
    %13 = vector.broadcast %12 : vector<1x256xf32> to vector<8x256xf32>
    %14 = arith.addf %11, %13 : vector<8x256xf32>
    %cst_11 = arith.constant 2.000000e-01 : f32
    %15 = vector.broadcast %cst_11 : f32 to vector<8x256xf32>
    %16 = arith.mulf %15, %14 : vector<8x256xf32>
    %17 = arith.maximumf %14, %16 : vector<8x256xf32>
    %c0_12 = arith.constant 0 : index
    %c0_13 = arith.constant 0 : index
    %18 = vector.load %arg14[%c0_12, %c0_13] : memref<8x512xf32, #tpu.memory_space<vmem>>, vector<8x512xf32>
    %19 = arith.truncf %17 : vector<8x256xf32> to vector<8x256xbf16>
    %c0_14 = arith.constant 0 : index
    %c0_15 = arith.constant 0 : index
    %20 = vector.load %arg7[%c0_14, %c0_15] : memref<256x512xbf16, #tpu.memory_space<vmem>>, vector<256x512xbf16>
    %cst_16 = arith.constant dense<0.000000e+00> : vector<8x512xf32>
    %21 = tpu.matmul %19, %20, %cst_16 {dimension_numbers = #tpu.dot_dimension_numbers<[1], [0], [0], [1], [0, 0, 1, 1], [], []>} : vector<8x256xbf16>, vector<256x512xbf16>, vector<8x512xf32> -> vector<8x512xf32>
    %22 = arith.addf %18, %21 : vector<8x512xf32>
    %c0_17 = arith.constant 0 : index
    %c0_18 = arith.constant 0 : index
    %23 = vector.load %arg14[%c0_17, %c0_18] : memref<8x512xf32, #tpu.memory_space<vmem>>, vector<8x512xf32>
    tpu.vector_store %arg14[%c0_17, %c0_18], %22 {strides = array<i32>} : memref<8x512xf32, #tpu.memory_space<vmem>>, vector<8x512xf32>,
    %c3_i32 = arith.constant 3 : i32
    %24 = arith.cmpi eq, %arg1, %c3_i32 : i32
    %25 = arith.extui %24 : i1 to i32
    %c0_i32_19 = arith.constant 0 : i32
    %26 = arith.cmpi ne, %25, %c0_i32_19 : i32
    scf.if %26 {
      %c0_20 = arith.constant 0 : index
      %c0_21 = arith.constant 0 : index
      %27 = vector.load %arg14[%c0_20, %c0_21] : memref<8x512xf32, #tpu.memory_space<vmem>>, vector<8x512xf32>
      %c0_22 = arith.constant 0 : index
      %c0_23 = arith.constant 0 : index
      %28 = vector.load %arg8[%c0_22, %c0_23] : memref<1x512xf32, #tpu.memory_space<vmem>>, vector<1x512xf32>
      %29 = vector.broadcast %28 : vector<1x512xf32> to vector<8x512xf32>
      %30 = arith.addf %27, %29 : vector<8x512xf32>
      %cst_24 = arith.constant 2.000000e-01 : f32
      %31 = vector.broadcast %cst_24 : f32 to vector<8x512xf32>
      %32 = arith.mulf %31, %30 : vector<8x512xf32>
      %33 = arith.maximumf %30, %32 : vector<8x512xf32>
      %34 = arith.truncf %33 : vector<8x512xf32> to vector<8x512xbf16>
      %c0_25 = arith.constant 0 : index
      %c0_26 = arith.constant 0 : index
      %35 = vector.load %arg9[%c0_25, %c0_26] : memref<512x256xbf16, #tpu.memory_space<vmem>>, vector<512x256xbf16>
      %cst_27 = arith.constant dense<0.000000e+00> : vector<8x256xf32>
      %36 = tpu.matmul %34, %35, %cst_27 {dimension_numbers = #tpu.dot_dimension_numbers<[1], [0], [0], [1], [0, 0, 1, 1], [], []>} : vector<8x512xbf16>, vector<512x256xbf16>, vector<8x256xf32> -> vector<8x256xf32>
      %c0_28 = arith.constant 0 : index
      %c0_29 = arith.constant 0 : index
      %37 = vector.load %arg10[%c0_28, %c0_29] : memref<1x256xf32, #tpu.memory_space<vmem>>, vector<1x256xf32>
      %38 = vector.broadcast %37 : vector<1x256xf32> to vector<8x256xf32>
      %39 = arith.addf %36, %38 : vector<8x256xf32>
      %cst_30 = arith.constant 2.000000e-01 : f32
      %40 = vector.broadcast %cst_30 : f32 to vector<8x256xf32>
      %41 = arith.mulf %40, %39 : vector<8x256xf32>
      %42 = arith.maximumf %39, %41 : vector<8x256xf32>
      %c0_31 = arith.constant 0 : index
      %c0_32 = arith.constant 0 : index
      %43 = vector.load %arg11[%c0_31, %c0_32] : memref<1x256xf32, #tpu.memory_space<vmem>>, vector<1x256xf32>
      %44 = vector.broadcast %43 : vector<1x256xf32> to vector<8x256xf32>
      %45 = arith.mulf %42, %44 : vector<8x256xf32>
      %cst_33 = arith.constant dense<0.000000e+00> : vector<8xf32>
      %46 = vector.multi_reduction <add>, %45, %cst_33 [1] : vector<8x256xf32> to vector<8xf32>
      %47 = vector.shape_cast %46 : vector<8xf32> to vector<8x1xf32>
      %c0_34 = arith.constant 0 : index
      %c0_35 = arith.constant 0 : index
      %48 = vector.load %arg12[%c0_34, %c0_35] : memref<1x1xf32, #tpu.memory_space<vmem>>, vector<1x1xf32>
      %49 = vector.broadcast %48 : vector<1x1xf32> to vector<8x1xf32>
      %50 = arith.addf %47, %49 : vector<8x1xf32>
      %51 = arith.negf %50 : vector<8x1xf32>
      %52 = math.exp %51 : vector<8x1xf32>
      %cst_36 = arith.constant 1.000000e+00 : f32
      %53 = vector.broadcast %cst_36 : f32 to vector<8x1xf32>
      %54 = arith.addf %53, %52 : vector<8x1xf32>
      %55 = arith.divf %53, %54 : vector<8x1xf32>
      %c0_37 = arith.constant 0 : index
      %c0_38 = arith.constant 0 : index
      %56 = vector.load %arg13[%c0_37, %c0_38] : memref<8x1xf32, #tpu.memory_space<vmem>>, vector<8x1xf32>
      tpu.vector_store %arg13[%c0_37, %c0_38], %55 {strides = array<i32>} : memref<8x1xf32, #tpu.memory_space<vmem>>, vector<8x1xf32>,
    } else {
    }
    return
  }
  func.func @transform_0(%arg0: i32, %arg1: i32) -> (i32, i32) {
    %c0_i32 = arith.constant 0 : i32
    %c0_i32_0 = arith.constant 0 : i32
    return %arg0, %c0_i32 : i32, i32
  }
  func.func @transform_1(%arg0: i32, %arg1: i32) -> (i32, i32) {
    %c0_i32 = arith.constant 0 : i32
    %c0_i32_0 = arith.constant 0 : i32
    return %arg0, %c0_i32 : i32, i32
  }
  func.func @transform_2(%arg0: i32, %arg1: i32) -> (i32, i32) {
    %c0_i32 = arith.constant 0 : i32
    %c0_i32_0 = arith.constant 0 : i32
    return %c0_i32, %arg1 : i32, i32
  }
  func.func @transform_3(%arg0: i32, %arg1: i32) -> (i32, i32) {
    %c0_i32 = arith.constant 0 : i32
    %c0_i32_0 = arith.constant 0 : i32
    return %c0_i32, %arg1 : i32, i32
  }
  func.func @transform_4(%arg0: i32, %arg1: i32) -> (i32, i32) {
    %c0_i32 = arith.constant 0 : i32
    %c0_i32_0 = arith.constant 0 : i32
    return %c0_i32, %arg1 : i32, i32
  }
  func.func @transform_5(%arg0: i32, %arg1: i32) -> (i32, i32) {
    %c0_i32 = arith.constant 0 : i32
    %c0_i32_0 = arith.constant 0 : i32
    return %arg1, %c0_i32 : i32, i32
  }
  func.func @transform_6(%arg0: i32, %arg1: i32) -> (i32, i32) {
    %c0_i32 = arith.constant 0 : i32
    %c0_i32_0 = arith.constant 0 : i32
    %c0_i32_1 = arith.constant 0 : i32
    return %c0_i32, %c0_i32_0 : i32, i32
  }
  func.func @transform_7(%arg0: i32, %arg1: i32) -> (i32, i32) {
    %c0_i32 = arith.constant 0 : i32
    %c0_i32_0 = arith.constant 0 : i32
    %c0_i32_1 = arith.constant 0 : i32
    return %c0_i32, %c0_i32_0 : i32, i32
  }
  func.func @transform_8(%arg0: i32, %arg1: i32) -> (i32, i32) {
    %c0_i32 = arith.constant 0 : i32
    %c0_i32_0 = arith.constant 0 : i32
    %c0_i32_1 = arith.constant 0 : i32
    return %c0_i32, %c0_i32_0 : i32, i32
  }
  func.func @transform_9(%arg0: i32, %arg1: i32) -> (i32, i32) {
    %c0_i32 = arith.constant 0 : i32
    %c0_i32_0 = arith.constant 0 : i32
    %c0_i32_1 = arith.constant 0 : i32
    return %c0_i32, %c0_i32_0 : i32, i32
  }
  func.func @transform_10(%arg0: i32, %arg1: i32) -> (i32, i32) {
    %c0_i32 = arith.constant 0 : i32
    %c0_i32_0 = arith.constant 0 : i32
    %c0_i32_1 = arith.constant 0 : i32
    return %c0_i32, %c0_i32_0 : i32, i32
  }
  func.func @transform_11(%arg0: i32, %arg1: i32) -> (i32, i32) {
    %c0_i32 = arith.constant 0 : i32
    %c0_i32_0 = arith.constant 0 : i32
    return %arg0, %c0_i32 : i32, i32
  }
}

</mosaic_0001>

<bundles_post_ra>
// kernel: discriminator_forward.1
= control target key start
LH: loop header
LB: loop body
LE: loop exit
PB: predicated region body
PF: predicated region fallthrough
CT: control target
= control target key end

     0   :  { %s4450_s0 = inlined_call_operand.vmem [shape: f32[8,784], index: 0, kind: input, shape index: {}]   ;;  %s4451_s1 = inlined_call_operand.vmem [shape: f32[8,10], index: 1, kind: input, shape index: {}]   ;;  %s4452_s2 = inlined_call_operand.hbm [shape: bf16[784,1024], index: 2, kind: input, shape index: {}]   ;;  %s4453_s3 = inlined_call_operand.hbm [shape: bf16[10,1024], index: 3, kind: input, shape index: {}]   ;;  %s4454_s4 = inlined_call_operand.hbm [shape: f32[1,1024], index: 4, kind: input, shape index: {}]   ;;  %s4455_s5 = inlined_call_operand.hbm [shape: bf16[1024,512], index: 5, kind: input, shape index: {}]   ;;  %s4456_s6 = inlined_call_operand.hbm [shape: f32[1,512], index: 6, kind: input, shape index: {}]   ;;  %s4457_s7 = inlined_call_operand.hbm [shape: bf16[512,256], index: 7, kind: input, shape index: {}]   ;;  %s4458_s8 = inlined_call_operand.hbm [shape: f32[1,256], index: 8, kind: input, shape index: {}]   ;;  %s4459_s9 = inlined_call_operand.hbm [shape: f32[1,256], index: 9, kind: input, shape index: {}]   ;;  %s4460_s10 = inlined_call_operand.<no memory space> [shape: f32[1,1], index: 10, kind: input, shape index: {}]   ;;  %s4461_s11 = inlined_call_operand.vmem [shape: f32[8,1], index: 11, kind: output, shape index: {}]  }
   0x1   :  { %4489 = sst [smem:[#allocation29_spill]] %s4450_s0  ;;  %v16_v0 = vstv %s4460_s10 }
   0x2   :  { %4490 = sst [smem:[#allocation30_spill]] %s4451_s1  ;;  %17 = vst [vmem:[#allocation3] sm:$0x1] %v16_v0 }
   0x3   :  { %4491 = sst [smem:[#allocation31_spill]] %s4453_s3 }
   0x4   :  { %4492 = sst [smem:[#allocation32_spill]] %s4456_s6 }
   0x5   :  { %4493 = sst [smem:[#allocation33_spill]] %s4457_s7 }
   0x6   :  { %4494 = sst [smem:[#allocation34_spill]] %s4461_s11 }
   0x7   :  { %18 = vsyncpa [#allocation5], 0 }
   0x8   :  { %20 = vsyncpa [#allocation5 + $0x1], 0 }
   0x9   :  { %21 = vsyncpa [#allocation7], 0 }
   0xa   :  { %23 = vsyncpa [#allocation7 + $0x1], 0 }
   0xb   :  { %24 = vsyncpa [#allocation10], 0 }
   0xc   :  { %26 = vsyncpa [#allocation10 + $0x1], 0 }
   0xd   :  { %27 = vsyncpa [#allocation13], 0 }
   0xe   :  { %28 = vsyncpa [#allocation16], 0  ;;  %s3858_s19 = smov 0   ;;  %s3860_s20 = smov 0  }
   0xf   :  { %s3862_s21 = smov 0   ;;  %s3864_s22 = smov 0  }
  0x10   :  { %s3866_s23 = smov 0   ;;  %s3868_s10 = smov 0  }
  0x11 LB: > { %4495 = sst [smem:[#allocation23_spill]] %s3766_s21  ;;  %s4462_s24 = sadd.s32 4294967295, %s3778_s10   ;;  %s3778_s10 = sphi %s3868_s10, %s34_s10   ;;  %s3774_s23 = sphi %s3866_s23, %s4542_s23   ;;  %s3770_s22 = sphi %s3864_s22, %s4541_s22   ;;  %s3766_s21 = sphi %s3862_s21, %s4537_s21   ;;  %s3762_s20 = sphi %s3860_s20, %s4540_s20   ;;  %s3758_s19 = sphi %s3858_s19, %s4539_s19  }
  0x12   : > { %4496 = sst [smem:[#allocation24_spill]] %s3770_s22  ;;  %p112_p0 = scmp.ne.s32.totalorder %s3766_s21, %s3762_s20 }
  0x13   : > { %p113_p1 = scmp.eq.s32.totalorder %s3778_s10, 0  ;;  %p118_p2 = scmp.ne.s32.totalorder %s3762_s20, %s3758_s19 }
  0x14   : > { %p3894_p3 = scmp.eq.s32.totalorder %s4462_s24, 0  ;;  %p2735_p5 = scmp.ge.s32.totalorder %s3778_s10, 1 }
  0x15   : > { %p3898_p4 = por %p113_p1, %p112_p0  ;;  %p338_p7 = scmp.lt.s32.totalorder %s3778_s10, 5 }
  0x16   : > { %s4497_s26 = scalar_select %p3894_p3, 1, 0 }
  0x17   : > { %s4499_s27 = scalar_select %p3898_p4, 1, 0 }
  0x18   : > { %4498 = sst [smem:[#allocation25_spill]] %s4497_s26  ;;  %p3905_p6 = por %p3894_p3, %p118_p2 }
  0x19   : > { %p3910_p8 = pnand %p2735_p5, %p338_p7  ;;  %s3780_s30 = smov [#allocation11]  }
  0x1a   : > { %s4500_s28 = scalar_select %p3905_p6, 1, 0 }
  0x1b   : > { %s4502_s29 = scalar_select %p3910_p8, 1, 0 }
  0x1c   : > { %4501 = sst [smem:[#allocation26_spill]] %s4500_s28  ;;  %s366_s12 = sshll.u32 %s3780_s30, 4  ;;  %s367_s12 = int_to_ptr.vmem [resolvable:$true] %s366_s12 }
  0x1d   : > { %p3036_p9 = pneg %p3910_p8  ;;  %s3781_s13 = smov [#allocation12]  }
  0x1e   : > { %s376_s14 = sshll.u32 %s3781_s13, 4  ;;  %s4504_s6 = sld [smem:[#allocation32_spill]]  ;;  %s3922_s14 = int_to_ptr.vmem [resolvable:$true] %s376_s14 }
  0x1f   : > { %p3918_p10 = pnand %p3036_p9, %p3894_p3 }
  0x21   : > { %s4503_s15 = scalar_select %p3918_p10, 1, 0 }
  0x22   : > { %p3932_p12 = pneg %p3918_p10 }
  0x24   : > { %s3476_s18 = scalar_lea.hbm %s4504_s6, 64 }
  0x25   : > { %p3477_p11 = scmp.ne.s32.totalorder %s4504_s6, %s3476_s18  ;;  %p3483_p1 = scmp.lt.u32.totalorder %s3476_s18, %s4504_s6 }
  0x26   : > { %s4505_s30 = scalar_select %p3932_p12, 1, 0 }
  0x27   : > { %p3479_p13 = pnand %p3932_p12, %p3477_p11 }
  0x29   : > { %p3480_p0 = pneg %p3479_p13 }
  0x2b   : > { %p3485_p2 = pnand %p3483_p1, %p3480_p0 }
  0x2d   : > { %3488 = shalt.err (!%p3485_p2)
}
  0x2e   : > { %s3489_s16 = scalar_lea.vmem %s367_s12, 64  ;;  %p3497_p3 = scmp.lt.s32.totalorder %s367_s12, %s367_s12 }
  0x2f   : > { %p3490_p5 = scmp.ne.s32.totalorder %s367_s12, %s3489_s16  ;;  %p3498_p6 = scmp.lt.s32.totalorder %s3489_s16, %s3489_s16 }
  0x31   : > { %p3492_p7 = pnand %p3490_p5, %p3932_p12  ;;  %p3499_p8 = por %p3498_p6, %p3497_p3 }
  0x33   : > { %p3493_p9 = pneg %p3492_p7 }
  0x35   : > { %p3500_p4 = pnand %p3499_p8, %p3493_p9 }
  0x37   : > { %3503 = shalt.err (!%p3500_p4)
}
  0x38   : > { %3039 = dma.hbm_to_vmem [thread:$0]  (!%p3918_p10), %s4504_s6, 64, %s367_s12, [#allocation10]  }
  0x39   : > { %s4506_s7 = sld [smem:[#allocation33_spill]] }
  0x3f   : > { %s3504_s19 = scalar_lea.hbm %s4506_s7, 8192 }
  0x40   : > { %p3505_p11 = scmp.ne.s32.totalorder %s4506_s7, %s3504_s19  ;;  %p3511_p4 = scmp.lt.u32.totalorder %s3504_s19, %s4506_s7 }
  0x42   : > { %p3507_p13 = pnand %p3505_p11, %p3932_p12 }
  0x44   : > { %p3508_p3 = pneg %p3507_p13 }
  0x46   : > { %p3513_p6 = pnand %p3511_p4, %p3508_p3 }
  0x48   : > { %3516 = shalt.err (!%p3513_p6)
}
  0x49   : > { %s3517_s12 = scalar_lea.vmem %s3922_s14, 8192  ;;  %p3525_p2 = scmp.lt.s32.totalorder %s3922_s14, %s3922_s14 }
  0x4a   : > { %p3518_p8 = scmp.ne.s32.totalorder %s3922_s14, %s3517_s12  ;;  %p3526_p5 = scmp.lt.s32.totalorder %s3517_s12, %s3517_s12 }
  0x4c   : > { %p3520_p0 = pnand %p3518_p8, %p3932_p12  ;;  %p3527_p7 = por %p3526_p5, %p3525_p2 }
  0x4e   : > { %p3521_p1 = pneg %p3520_p0 }
  0x50   : > { %p3528_p9 = pnand %p3527_p7, %p3521_p1 }
  0x52   : > { %3531 = shalt.err (!%p3528_p9)
}
  0x53   : > { %s4468_s11 = smov 128   ;;  %s4470_s0 = smov 8  }
  0x54   : > { %3042 = dma.hbm_to_vmem [thread:$0]  (!%p3918_p10), %s4506_s7, 8192, %s3922_s14, [#allocation13], %s4468_s11, %s4468_s11, %s4470_s0  }
  0x55   : > { %s43_s25 = sadd.s32 1, %s3774_s23  ;;  %p3066_p11 = scmp.lt.s32.totalorder %s3778_s10, 4 }
  0x56   : > { %p44_p13 = scmp.ge.s32.totalorder %s43_s25, 4  ;;  %s3977_s18 = sand.u32 1, %s3766_s21  }
  0x57   : > { %s4473_s19 = sshll.u32 %s3774_s23, 7  ;;  %p4507_p3 = scmp.ne.s32.totalorder %s4499_s27, 0 }
  0x58   : > { %s4544_s25 = smov (%p44_p13, %s43_s25), 0  ;;  %s4474_s12 = sand.u32 1, %s3778_s10  }
  0x59   : > { %p3982_p4 = pnand %p3066_p11, %p4507_p3  ;;  %4509 = sst [smem:[#allocation27_spill]] %s4544_s25 }
  0x5a   : > { %s102_s16 = ssub.s32 %s3774_s23, %s4544_s25  ;;  %s2745_s14 = sshll.u32 %s3977_s18, 4 }
  0x5b   : > { %s4508_s13 = scalar_select %p3982_p4, 1, 0 }
  0x5c   : > { %p103_p6 = scmp.eq.s32.totalorder %s102_s16, 0  ;;  %s4510_s3 = sld [smem:[#allocation31_spill]] }
  0x5d   : > { %s4511_s0 = sadd.s32 1, %s3766_s21  ;;  %s440_s6 = scalar_lea.vmem [#allocation6], %s2745_s14 }
  0x5e   : > { %s4002_s27 = scalar_select %p103_p6, %s3766_s21, %s4511_s0  }
  0x5f   : > { %s447_s7 = sshll.u32 %s440_s6, 4  ;;  %s3784_s1 = smov [#allocation14]   ;;  %s4004_s7 = int_to_ptr.vmem [resolvable:$true] %s447_s7 }
  0x60   : > { %4512 = sst [smem:[#allocation28_spill]] %s4002_s27  ;;  %s390_s25 = sshll.u32 %s3784_s1, 4  ;;  %s4006_s25 = int_to_ptr.vmem [resolvable:$true] %s390_s25 }
  0x61   : > { %s4010_s16 = scalar_lea.sflag [#allocation7], %s4474_s12  ;;  %p4016_p0 = pneg %p3982_p4 }
  0x62   : > { %s3997_s11 = scalar_lea.hbm %s4510_s3, %s4473_s19  ;;  %s3537_s0 = scalar_lea.hbm %s4510_s3, 1024 }
  0x63   : > { %s3532_s24 = scalar_lea.hbm %s3997_s11, 256  ;;  %p3538_p5 = scmp.lt.u32.totalorder %s3997_s11, %s4510_s3 }
  0x64   : > { %p3533_p8 = scmp.ne.s32.totalorder %s3997_s11, %s3532_s24  ;;  %p3539_p7 = scmp.lt.u32.totalorder %s3537_s0, %s3532_s24 }
  0x65   : > { %s4513_s17 = scalar_select %p4016_p0, 1, 0 }
  0x66   : > { %p3535_p1 = pnand %p4016_p0, %p3533_p8  ;;  %p3540_p9 = por %p3539_p7, %p3538_p5 }
  0x67   : > { %p3541_p11 = scmp.lt.u32.totalorder %s3532_s24, %s3997_s11 }
  0x68   : > { %p3536_p2 = pneg %p3535_p1 }
  0x69   : > { %p3542_p13 = por %p3541_p11, %p3540_p9 }
  0x6b   : > { %p3543_p3 = pnand %p3542_p13, %p3536_p2 }
  0x6d   : > { %3546 = shalt.err (!%p3543_p3)
}
  0x6e   : > { %s3547_s12 = scalar_lea.vmem %s4004_s7, 256  ;;  %s3785_s6 = smov [#allocation6]  }
  0x6f   : > { %p3548_p6 = scmp.ne.s32.totalorder %s4004_s7, %s3547_s12  ;;  %s3552_s1 = sshll.u32 %s3785_s6, 4  ;;  %s3553_s1 = int_to_ptr.vmem [resolvable:$false] %s3552_s1 }
  0x70   : > { %s3554_s19 = scalar_lea.vmem %s3553_s1, 512  ;;  %p3555_p10 = scmp.lt.s32.totalorder %s4004_s7, %s3553_s1 }
  0x71   : > { %p3550_p8 = pnand %p3548_p6, %p4016_p0  ;;  %p3556_p12 = scmp.lt.s32.totalorder %s3554_s19, %s3547_s12 }
  0x73   : > { %p3551_p1 = pneg %p3550_p8  ;;  %p3557_p5 = por %p3556_p12, %p3555_p10 }
  0x75   : > { %p3558_p7 = pnand %p3557_p5, %p3551_p1 }
  0x77   : > { %3561 = shalt.err (!%p3558_p7)
}
  0x78   : > { %s4480_s24 = smov 512   ;;  %s4514_s0 = smov 8  }
  0x79   : > { %s4515_s14 = smov 128   ;;  %s3562_s27 = scalar_lea.hbm %s4458_s8, 32 }
  0x7a   : > { %3055 = dma.hbm_to_vmem [thread:$0]  (!%p3982_p4), %s3997_s11, 256, %s4004_s7, %s4010_s16, %s4480_s24, %s4515_s14, %s4514_s0  }
  0x7b   : > { %p3563_p10 = scmp.ne.s32.totalorder %s4458_s8, %s3562_s27  ;;  %p4516_p12 = scmp.ne.s32.totalorder %s4505_s30, 0 }
  0x7c   : > { %p3569_p11 = scmp.lt.u32.totalorder %s3562_s27, %s4458_s8 }
  0x7d   : > { %p3565_p2 = pnand %p3563_p10, %p4516_p12 }
  0x7f   : > { %p3566_p9 = pneg %p3565_p2 }
  0x81   : > { %p3571_p13 = pnand %p3569_p11, %p3566_p9 }
  0x83   : > { %3574 = shalt.err (!%p3571_p13)
}
  0x84   : > { %s3575_s7 = scalar_lea.vmem %s4006_s25, 32  ;;  %p3583_p1 = scmp.lt.s32.totalorder %s4006_s25, %s4006_s25 }
  0x85   : > { %p3576_p3 = scmp.ne.s32.totalorder %s4006_s25, %s3575_s7  ;;  %p3584_p5 = scmp.lt.s32.totalorder %s3575_s7, %s3575_s7 }
  0x87   : > { %p3578_p6 = pnand %p3576_p3, %p4516_p12  ;;  %p3585_p7 = por %p3584_p5, %p3583_p1 }
  0x89   : > { %p3579_p8 = pneg %p3578_p6 }
  0x8b   : > { %p3586_p10 = pnand %p3585_p7, %p3579_p8 }
  0x8d   : > { %3589 = shalt.err (!%p3586_p10)
}
  0x8e   : > { %p4517_p2 = scmp.ne.s32.totalorder %s4503_s15, 0  ;;  %s3787_s11 = smov [#allocation15]  }
  0x8f   : > { %s401_s27 = sshll.u32 %s3787_s11, 4  ;;  %s3010_s6 = smul.u32 784, %s3977_s18  ;;  %s402_s27 = int_to_ptr.vmem [resolvable:$true] %s401_s27 }
  0x90   : > { %3045 = dma.hbm_to_vmem [thread:$0]  (!%p4517_p2), %s4458_s8, 32, %s4006_s25, [#allocation13]  }
  0x91   : > { %s4518_s1 = sshll.u32 %s3774_s23, 7  ;;  %s3590_s26 = scalar_lea.hbm %s4459_s9, 32 }
  0x92   : > { %s4072_s7 = scalar_lea.hbm %s4452_s2, %s4518_s1  ;;  %p3591_p9 = scmp.ne.s32.totalorder %s4459_s9, %s3590_s26 }
  0x93   : > { %p3597_p3 = scmp.lt.u32.totalorder %s3590_s26, %s4459_s9 }
  0x94   : > { %p3593_p11 = pnand %p3591_p9, %p4516_p12 }
  0x96   : > { %p3594_p13 = pneg %p3593_p11 }
  0x98   : > { %p3599_p6 = pnand %p3597_p3, %p3594_p13 }
  0x9a   : > { %3602 = shalt.err (!%p3599_p6)
}
  0x9b   : > { %s3603_s11 = scalar_lea.vmem %s402_s27, 32  ;;  %p3611_p7 = scmp.lt.s32.totalorder %s402_s27, %s402_s27 }
  0x9c   : > { %p3604_p8 = scmp.ne.s32.totalorder %s402_s27, %s3603_s11  ;;  %p3612_p10 = scmp.lt.s32.totalorder %s3603_s11, %s3603_s11 }
  0x9e   : > { %p3606_p1 = pnand %p3604_p8, %p4516_p12  ;;  %p3613_p4 = por %p3612_p10, %p3611_p7 }
  0xa0   : > { %p3607_p5 = pneg %p3606_p1 }
  0xa2   : > { %p3614_p0 = pnand %p3613_p4, %p3607_p5 }
  0xa4   : > { %3617 = shalt.err (!%p3614_p0)
}
  0xa5   : > { %3048 = dma.hbm_to_vmem [thread:$0]  (!%p4517_p2), %s4459_s9, 32, %s402_s27, [#allocation16]  }
  0xa6   : > { %s2748_s26 = sshll.u32 %s3977_s18, 1  ;;  %s419_s30 = scalar_lea.vmem [#allocation4], %s3010_s6 }
  0xa7   : > { %s426_s24 = sshll.u32 %s419_s30, 4  ;;  %s3003_s1 = sshll.u32 %s3774_s23, 5  ;;  %s4093_s24 = int_to_ptr.vmem [resolvable:$true] %s426_s24 }
  0xa8   : > { %s416_s12 = scalar_lea.sflag [#allocation5], %s3977_s18  ;;  %s3618_s15 = scalar_lea.hbm %s4072_s7, 12544 }
  0xa9   : > { %p3619_p4 = scmp.ne.s32.totalorder %s4072_s7, %s3618_s15  ;;  %p4519_p0 = scmp.ne.s32.totalorder %s4513_s17, 0 }
  0xaa   : > { %s3623_s25 = scalar_lea.hbm %s4452_s2, 50176  ;;  %p3624_p2 = scmp.lt.u32.totalorder %s4072_s7, %s4452_s2 }
  0xab   : > { %p3621_p12 = pnand %p3619_p4, %p4519_p0  ;;  %p3625_p11 = scmp.lt.u32.totalorder %s3623_s25, %s3618_s15 }
  0xac   : > { %p3627_p3 = scmp.lt.u32.totalorder %s3618_s15, %s4072_s7 }
  0xad   : > { %p3622_p9 = pneg %p3621_p12  ;;  %p3626_p13 = por %p3625_p11, %p3624_p2 }
  0xaf   : > { %p3628_p6 = por %p3627_p3, %p3626_p13 }
  0xb1   : > { %p3629_p8 = pnand %p3628_p6, %p3622_p9 }
  0xb3   : > { %3632 = shalt.err (!%p3629_p8)
}
  0xb4   : > { %s3633_s27 = scalar_lea.vmem %s4093_s24, 12544  ;;  %s3788_s6 = smov [#allocation4]  }
  0xb5   : > { %p3634_p1 = scmp.ne.s32.totalorder %s4093_s24, %s3633_s27  ;;  %s3638_s22 = sshll.u32 %s3788_s6, 4  ;;  %s3639_s22 = int_to_ptr.vmem [resolvable:$false] %s3638_s22 }
  0xb6   : > { %s3640_s28 = scalar_lea.vmem %s3639_s22, 25088  ;;  %p3641_p10 = scmp.lt.s32.totalorder %s4093_s24, %s3639_s22 }
  0xb7   : > { %p3636_p5 = pnand %p3634_p1, %p4519_p0  ;;  %p3642_p4 = scmp.lt.s32.totalorder %s3640_s28, %s3633_s27 }
  0xb9   : > { %p3637_p7 = pneg %p3636_p5  ;;  %p3643_p12 = por %p3642_p4, %p3641_p10 }
  0xbb   : > { %p3644_p2 = pnand %p3643_p12, %p3637_p7 }
  0xbd   : > { %3647 = shalt.err (!%p3644_p2)
}
  0xbe   : > { %p4520_p9 = scmp.ne.s32.totalorder %s4508_s13, 0  ;;  %s4521_s30 = smov 512  }
  0xbf   : > { %s4128_s3 = scalar_lea.hbm %s4454_s4, %s3003_s1  ;;  %s461_s25 = scalar_lea.vmem [#allocation8], %s2748_s26 }
  0xc0   : > { %3052 = dma.hbm_to_vmem [thread:$0]  (!%p4520_p9), %s4072_s7, 12544, %s4093_s24, %s416_s12, %s4521_s30, %s4515_s14, %s4514_s0  }
  0xc1   : > { %s469_s21 = sshll.u32 %s461_s25, 4  ;;  %s3648_s11 = scalar_lea.hbm %s4128_s3, 32  ;;  %s470_s21 = int_to_ptr.vmem [resolvable:$true] %s469_s21 }
  0xc2   : > { %p3649_p11 = scmp.ne.s32.totalorder %s4128_s3, %s3648_s11  ;;  %s3653_s7 = scalar_lea.hbm %s4454_s4, 128 }
  0xc3   : > { %p3654_p6 = scmp.lt.u32.totalorder %s4128_s3, %s4454_s4  ;;  %p3655_p8 = scmp.lt.u32.totalorder %s3653_s7, %s3648_s11 }
  0xc4   : > { %p3651_p13 = pnand %p3649_p11, %p4519_p0  ;;  %p3657_p5 = scmp.lt.u32.totalorder %s3648_s11, %s4128_s3 }
  0xc5   : > { %p3656_p1 = por %p3655_p8, %p3654_p6 }
  0xc6   : > { %p3652_p3 = pneg %p3651_p13 }
  0xc7   : > { %p3658_p7 = por %p3657_p5, %p3656_p1 }
  0xc9   : > { %p3659_p10 = pnand %p3658_p7, %p3652_p3 }
  0xcb   : > { %3662 = shalt.err (!%p3659_p10)
}
  0xcc   : > { %s3663_s26 = scalar_lea.vmem %s470_s21, 32  ;;  %s3789_s12 = smov [#allocation8]  }
  0xcd   : > { %p3664_p4 = scmp.ne.s32.totalorder %s470_s21, %s3663_s26  ;;  %s3668_s27 = sshll.u32 %s3789_s12, 4  ;;  %s3669_s27 = int_to_ptr.vmem [resolvable:$false] %s3668_s27 }
  0xce   : > { %s3670_s6 = scalar_lea.vmem %s3669_s27, 64  ;;  %p3671_p11 = scmp.lt.s32.totalorder %s470_s21, %s3669_s27 }
  0xcf   : > { %p3666_p12 = pnand %p3664_p4, %p4519_p0  ;;  %p3672_p13 = scmp.lt.s32.totalorder %s3670_s6, %s3663_s26 }
  0xd1   : > { %p3667_p2 = pneg %p3666_p12  ;;  %p3673_p9 = por %p3672_p13, %p3671_p11 }
  0xd3   : > { %p3674_p6 = pnand %p3673_p9, %p3667_p2 }
  0xd5   : > { %3677 = shalt.err (!%p3674_p6)
}
  0xd6   : > { %p4522_p8 = scmp.ne.s32.totalorder %s4508_s13, 0  ;;  %s2751_s22 = sshll.u32 %s3977_s18, 9 }
  0xd7   : > { %s3005_s28 = sshll.u32 %s3774_s23, 13  ;;  %s480_s25 = scalar_lea.vmem [#allocation9], %s2751_s22 }
  0xd8   : > { %3058 = dma.hbm_to_vmem [thread:$0]  (!%p4522_p8), %s4128_s3, 32, %s470_s21, %s4010_s16  }
  0xd9   : > { %s4155_s19 = scalar_lea.hbm %s4455_s5, %s3005_s28  ;;  %s488_s11 = sshll.u32 %s480_s25, 4  ;;  %s4157_s11 = int_to_ptr.vmem [resolvable:$true] %s488_s11 }
  0xda   : > { %s4523_s0 = sand.u32 1, %s3778_s10   ;;  %s3678_s7 = scalar_lea.hbm %s4155_s19, 8192 }
  0xdb   : > { %s4161_s14 = scalar_lea.sflag [#allocation10], %s4523_s0  ;;  %p3679_p9 = scmp.ne.s32.totalorder %s4155_s19, %s3678_s7 }
  0xdc   : > { %s3683_s3 = scalar_lea.hbm %s4455_s5, 32768  ;;  %p3684_p5 = scmp.lt.u32.totalorder %s4155_s19, %s4455_s5 }
  0xdd   : > { %p3681_p3 = pnand %p3679_p9, %p4519_p0  ;;  %p3685_p7 = scmp.lt.u32.totalorder %s3683_s3, %s3678_s7 }
  0xde   : > { %p3687_p4 = scmp.lt.u32.totalorder %s3678_s7, %s4155_s19 }
  0xdf   : > { %p3682_p1 = pneg %p3681_p3  ;;  %p3686_p10 = por %p3685_p7, %p3684_p5 }
  0xe1   : > { %p3688_p12 = por %p3687_p4, %p3686_p10 }
  0xe3   : > { %p3689_p2 = pnand %p3688_p12, %p3682_p1 }
  0xe5   : > { %3692 = shalt.err (!%p3689_p2)
}
  0xe6   : > { %s3693_s1 = scalar_lea.vmem %s4157_s11, 8192  ;;  %s3790_s26 = smov [#allocation9]  }
  0xe7   : > { %p3694_p11 = scmp.ne.s32.totalorder %s4157_s11, %s3693_s1  ;;  %s3698_s12 = sshll.u32 %s3790_s26, 4  ;;  %s3699_s12 = int_to_ptr.vmem [resolvable:$false] %s3698_s12 }
  0xe8   : > { %s3700_s27 = scalar_lea.vmem %s3699_s12, 16384  ;;  %p3701_p9 = scmp.lt.s32.totalorder %s4157_s11, %s3699_s12 }
  0xe9   : > { %p3696_p13 = pnand %p3694_p11, %p4519_p0  ;;  %p3702_p3 = scmp.lt.s32.totalorder %s3700_s27, %s3693_s1 }
  0xeb   : > { %p3697_p6 = pneg %p3696_p13  ;;  %p3703_p5 = por %p3702_p3, %p3701_p9 }
  0xed   : > { %p3704_p7 = pnand %p3703_p5, %p3697_p6 }
  0xef   : > { %3707 = shalt.err (!%p3704_p7)
}
  0xf0   : > { %s3791_s6 = smov 256   ;;  %s3792_s22 = smov 16  }
  0xf1   : > { %3061 = dma.hbm_to_vmem [thread:$0]  (!%p4522_p8), %s4155_s19, 8192, %s4157_s11, %s4161_s14, %s3791_s6, %s3791_s6, %s3792_s22  }
  0xf2   : > { %p4524_p0 = scmp.ne.s32.totalorder %s4502_s29, 0 }
  0xf3   : > { %s4525_s17 = sld [smem:[#allocation26_spill]] (!%p4524_p0)  ;;  %s502_s28 = sand.u32 (!%p4524_p0), 1, %s3762_s20  }
  0xf4   : > { %500 = sbr.rel (%p4524_p0) target bundleno = 1275 (0x4fb), region = 64  ;;  %s503_s15 = scalar_lea.sflag (!%p4524_p0), [#allocation5], %s502_s28 }
  0xf5   : > { %s3011_s30 = smul.u32 (!%p4524_p0), 784, %s502_s28 }
  0xf7   : > { %s4188_s25 = scalar_lea.vmem (!%p4524_p0), [#allocation4], %s3011_s30 }
  0xf9   : > { %p4526_p1 = scmp.ne.s32.totalorder (!%p4524_p0), %s4525_s17, 0 }
  0xfb   : > { %3733 = dma.done.wait (%p4526_p1), %s503_s15, 12544  }
  0xfc   : > { %3735 = vsyncadd (%p4526_p1), %s503_s15, 4294954752  ;;  %s4527_s0 = sadd.s32 4294967295, %s3778_s10   ;;  %s2756_s19 = sshll.u32 %s502_s28, 4 }
  0xfd   : > { %s511_s13 = sand.u32 1, %s4527_s0   ;;  %s515_s29 = scalar_lea.vmem [#allocation6], %s2756_s19 }
  0xfe   : > { %s512_s11 = scalar_lea.sflag [#allocation7], %s511_s13 }
  0xff   : > { %3737 = dma.done.wait (%p4526_p1), %s512_s11, 288  }
 0x100   : > { %3739 = vsyncadd (%p4526_p1), %s512_s11, 4294967008  ;;  %s2757_s14 = sshll.u32 %s502_s28, 1  ;;  %s2758_s7 = sshll.u32 %s502_s28, 9 }
 0x101   : > { %s4200_s18 = scalar_lea.vmem [#allocation8], %s2757_s14  ;;  %s530_s16 = scalar_lea.sflag [#allocation10], %s511_s13 }
 0x102   : > { %s4202_s3 = scalar_lea.vmem [#allocation9], %s2758_s7 }
 0x103   : > { %3741 = dma.done.wait (%p4526_p1), %s530_s16, 8192  }
 0x104   : > { %3743 = vsyncadd (%p4526_p1), %s530_s16, 4294959104  ;;  %s4528_s21 = sld [smem:[#allocation25_spill]] }
 0x10a   : > { %p4529_p8 = scmp.ne.s32.totalorder %s4528_s21, 0 }
 0x10c   : > { %3745 = dma.done.wait (%p4529_p8), [#allocation10], 64  }
 0x10d   : > { %3747 = vsyncadd (%p4529_p8), [#allocation10], 4294967232 }
 0x10e   : > { %3749 = dma.done.wait (%p4529_p8), [#allocation13], 8224  }
 0x10f   : > { %3751 = vsyncadd (%p4529_p8), [#allocation13], 4294959072 }
 0x110   : > { %3753 = dma.done.wait (%p4529_p8), [#allocation16], 32  }
 0x111   : > { %3755 = vsyncadd (%p4529_p8), [#allocation16], 4294967264  ;;  %s4530_s24 = sld [smem:[#allocation24_spill]] }
 0x117   : > { %p2763_p10 = scmp.ne.s32.totalorder %s4530_s24, 0 }
 0x118   : > { %v3793_v1 = vmov (!%p2763_p10), 0.0  }
 0x119   : > { %632 = sbr.rel (%p2763_p10) target bundleno = 288 (0x120), region = 100  ;;  %633 = vst [vmem:[#allocation2] sm:$0xff] (!%p2763_p10), %v3793_v1  ;;  %634 = vst [vmem:[#allocation2 + $0x8] sm:$0xff] (!%p2763_p10), %v3793_v1 }
 0x11a   : > { %635 = vst [vmem:[#allocation2 + $0x10] sm:$0xff] (!%p2763_p10), %v3793_v1  ;;  %636 = vst [vmem:[#allocation2 + $0x18] sm:$0xff] (!%p2763_p10), %v3793_v1 }
 0x120 PF: > { %v3130_v2 = vld [vmem:[%s515_s29 + $0x4] ss:$8 sps:$4 sm:$0x1f]   ;;  %vm765_vm0 = vcmask 1044480   ;;  %v3135_v5 = vld [vmem:[%s4188_s25] ss:$8 sps:$4 sm:$0xff]  }
 0x121   : > { %v3132_v3 = vld [vmem:[%s4188_s25 + $0x4] ss:$8 sps:$4 sm:$0xff]   ;;  %2766 = vmatprep.subr.msk.bf16.mxu0 %vm765_vm0, %v3130_v2  ;;  %v3134_v4 = vld [vmem:[%s515_s29] ss:$8 sps:$4 sm:$0x1f]   ;;  %v3794_v6 = vmov 0  }
 0x122   : > { %804 = vmatprep.mubr.bf16.mxu0 %v3794_v6  ;;  %1307 = vmatprep.subr.bf16.mxu1 %v3132_v3  ;;  %v3136_v7 = vld [vmem:[%s4188_s25 + $0x14] ss:$8 sps:$4 sm:$0xff]   ;;  %v767_v8 = vsel %vm765_vm0, %v3134_v4, 0  ;;  %v3138_v9 = vld [vmem:[%s4188_s25 + $0x100] ss:$8 sps:$4 sm:$0xff]   ;;  %s4531_s12 = sld [smem:[#allocation30_spill]] }
 0x123   : > { %1308 = vmatpush1.bf16.msra.mxu1 %v3135_v5  ;;  %v3140_v10 = vld [vmem:[%s4188_s25 + $0x104] ss:$8 sps:$4 sm:$0xff]   ;;  %773 = vmatpush1.bf16.msra.mxu0 %v767_v8  ;;  %vm761_vm1 = vcmask 80896   ;;  %v3141_v12 = vld [vmem:[%s4188_s25 + $0x10] ss:$8 sps:$4 sm:$0xff]   ;;  %s4532_s22 = sld [smem:[#allocation29_spill]] }
 0x124   : > { %1309 = vmatprep.subr.bf16.mxu1 %v3136_v7  ;;  %1348 = vmatprep.subr.bf16.mxu0 %v3140_v10  ;;  %v3142_v14 = vld [vmem:[%s4188_s25 + $0x24] ss:$8 sps:$4 sm:$0xff]   ;;  %v3144_v15 = vld [vmem:[%s4188_s25 + $0x110] ss:$8 sps:$4 sm:$0xff]   ;;  %v3146_v16 = vld [vmem:[%s4188_s25 + $0x114] ss:$8 sps:$4 sm:$0xff]  }
 0x125   : > { %v3147_v17 = vld [vmem:[%s4188_s25 + $0x20] ss:$8 sps:$4 sm:$0xff]   ;;  %v3148_v18 = vld [vmem:[%s4188_s25 + $0x34] ss:$8 sps:$4 sm:$0xff]   ;;  %v3152_v19 = vld [vmem:[%s4188_s25 + $0x124] ss:$8 sps:$4 sm:$0xff]  }
 0x126   : > { %v3153_v20 = vld [vmem:[%s4188_s25 + $0x30] ss:$8 sps:$4 sm:$0xff]   ;;  %v3150_v21 = vld [vmem:[%s4188_s25 + $0x120] ss:$8 sps:$4 sm:$0xff]   ;;  %v3154_v22 = vld [vmem:[%s4188_s25 + $0x44] ss:$8 sps:$4 sm:$0xff]  }
 0x127   : > { %1310 = vmatpush1.bf16.msra.mxu1 %v3141_v12  ;;  %v3158_v23 = vld [vmem:[%s4188_s25 + $0x134] ss:$8 sps:$4 sm:$0xff]   ;;  %v3156_v24 = vld [vmem:[%s4188_s25 + $0x130] ss:$8 sps:$4 sm:$0xff]   ;;  %v3159_v25 = vld [vmem:[%s4188_s25 + $0x40] ss:$8 sps:$4 sm:$0xff]  }
 0x128   : > { %v651_v11 = vld [vmem:[%s4531_s12] sm:$0xff]  ;;  %1311 = vmatprep.subr.bf16.mxu1 %v3142_v14  ;;  %vm1303_vm2 = vcmask 130048  }
 0x129   : > { %v652_v13 = vpack.c.bf16 %v651_v11, %v651_v11  ;;  %v3160_v26 = vld [vmem:[%s4188_s25 + $0x54] ss:$8 sps:$4 sm:$0xff]   ;;  %v3164_v27 = vld [vmem:[%s4188_s25 + $0x144] ss:$8 sps:$4 sm:$0xff]   ;;  %v3165_v28 = vld [vmem:[%s4188_s25 + $0x50] ss:$8 sps:$4 sm:$0xff]   ;;  %s4533_s17 = smov %s4532_s22 }
 0x12a   : > { %v3162_v29 = vld [vmem:[%s4188_s25 + $0x140] ss:$8 sps:$4 sm:$0xff]   ;;  %v3166_v30 = vld [vmem:[%s4188_s25 + $0x64] ss:$8 sps:$4 sm:$0xff]   ;;  %v3170_v31 = vld [vmem:[%s4188_s25 + $0x154] ss:$8 sps:$4 sm:$0xff]  }
 0x12b   : > { %2767 = vmatmul.mubr.msk.bf16.vlgmr.msra.gmra.mrb[0].mxu0 %vm761_vm1, %v652_v13  ;;  %1312 = vmatpush1.bf16.msra.mxu1 %v3147_v17  ;;  %v3168_v32 = vld [vmem:[%s4188_s25 + $0x150] ss:$8 sps:$4 sm:$0xff]   ;;  %v3171_v33 = vld [vmem:[%s4188_s25 + $0x60] ss:$8 sps:$4 sm:$0xff]   ;;  %v3172_v34 = vld [vmem:[%s4188_s25 + $0x74] ss:$8 sps:$4 sm:$0xff]  }
 0x12c   : > { %1349 = vmatpush1.bf16.msra.mxu0 %v3138_v9  ;;  %1313 = vmatprep.subr.bf16.mxu1 %v3148_v18  ;;  %v3176_v35 = vld [vmem:[%s4188_s25 + $0x164] ss:$8 sps:$4 sm:$0xff]   ;;  %v3177_v36 = vld [vmem:[%s4188_s25 + $0x70] ss:$8 sps:$4 sm:$0xff]   ;;  %v3174_v37 = vld [vmem:[%s4188_s25 + $0x160] ss:$8 sps:$4 sm:$0xff]  }
 0x12d   : > { %1350 = vmatprep.subr.bf16.mxu0 %v3146_v16  ;;  %v3178_v38 = vld [vmem:[%s4188_s25 + $0x84] ss:$8 sps:$4 sm:$0xff]   ;;  %v3182_v39 = vld [vmem:[%s4188_s25 + $0x174] ss:$8 sps:$4 sm:$0xff]   ;;  %v3180_v40 = vld [vmem:[%s4188_s25 + $0x170] ss:$8 sps:$4 sm:$0xff]  }
 0x12e   : > { %v3183_v41 = vld [vmem:[%s4188_s25 + $0x80] ss:$8 sps:$4 sm:$0xff]   ;;  %v3184_v42 = vld [vmem:[%s4188_s25 + $0x94] ss:$8 sps:$4 sm:$0xff]   ;;  %v3188_v43 = vld [vmem:[%s4188_s25 + $0x184] ss:$8 sps:$4 sm:$0xff]  }
 0x12f   : > { %1314 = vmatpush1.bf16.msra.mxu1 %v3153_v20  ;;  %v3189_v44 = vld [vmem:[%s4188_s25 + $0x90] ss:$8 sps:$4 sm:$0xff]   ;;  %v3186_v45 = vld [vmem:[%s4188_s25 + $0x180] ss:$8 sps:$4 sm:$0xff]   ;;  %v3190_v46 = vld [vmem:[%s4188_s25 + $0xa4] ss:$8 sps:$4 sm:$0xff]  }
 0x130   : > { %1351 = vmatpush1.bf16.msra.mxu0 %v3144_v15  ;;  %1315 = vmatprep.subr.bf16.mxu1 %v3154_v22  ;;  %v3194_v47 = vld [vmem:[%s4188_s25 + $0x194] ss:$8 sps:$4 sm:$0xff]   ;;  %v3192_v48 = vld [vmem:[%s4188_s25 + $0x190] ss:$8 sps:$4 sm:$0xff]   ;;  %v3195_v49 = vld [vmem:[%s4188_s25 + $0xa0] ss:$8 sps:$4 sm:$0xff]  }
 0x131   : > { %1352 = vmatprep.subr.bf16.mxu0 %v3152_v19  ;;  %v3196_v50 = vld [vmem:[%s4188_s25 + $0xb4] ss:$8 sps:$4 sm:$0xff]   ;;  %v3200_v51 = vld [vmem:[%s4188_s25 + $0x1a4] ss:$8 sps:$4 sm:$0xff]   ;;  %v3198_v53 = vld [vmem:[%s4188_s25 + $0x1a0] ss:$8 sps:$4 sm:$0xff]  }
 0x132   : > { %v638_v52 = vld [vmem:[%s4532_s22 + $0x8] sm:$0xff]  ;;  %v640_v58 = vld [vmem:[%s4533_s17 + $0x18] sm:$0xff]  ;;  %v637_v10 = vld [vmem:[%s4533_s17] sm:$0xff] }
 0x133   : > { %1316 = vmatpush1.bf16.msra.mxu1 %v3159_v25  ;;  %v3201_v54 = vld [vmem:[%s4188_s25 + $0xb0] ss:$8 sps:$4 sm:$0xff]   ;;  %v645_v55 = vpack.c.bf16 %v638_v52, %v638_v52  ;;  %v3202_v56 = vld [vmem:[%s4188_s25 + $0xc4] ss:$8 sps:$4 sm:$0xff]   ;;  %v3206_v57 = vld [vmem:[%s4188_s25 + $0x1b4] ss:$8 sps:$4 sm:$0xff]   ;;  %v647_v59 = vpack.c.bf16 %v640_v58, %v640_v58  ;;  %v644_v14 = vpack.c.bf16 %v637_v10, %v637_v10 }
 0x134   : > { %1353 = vmatpush1.bf16.msra.mxu0 %v3150_v21  ;;  %1317 = vmatprep.subr.bf16.mxu1 %v3160_v26  ;;  %v3207_v60 = vld [vmem:[%s4188_s25 + $0xc0] ss:$8 sps:$4 sm:$0xff]   ;;  %v3204_v61 = vld [vmem:[%s4188_s25 + $0x1b0] ss:$8 sps:$4 sm:$0xff]   ;;  %v3208_v62 = vld [vmem:[%s4188_s25 + $0xd4] ss:$8 sps:$4 sm:$0xff]  }
 0x135   : > { %1354 = vmatprep.subr.bf16.mxu0 %v3158_v23  ;;  %1339 = vmatprep.mubr.bf16.mxu1 %v645_v55  ;;  %v3212_v63 = vld [vmem:[%s4188_s25 + $0x1c4] ss:$8 sps:$4 sm:$0xff]   ;;  %v3213_v0 = vld [vmem:[%s4188_s25 + $0xd0] ss:$8 sps:$4 sm:$0xff]   ;;  %v3210_v1 = vld [vmem:[%s4188_s25 + $0x1c0] ss:$8 sps:$4 sm:$0xff]  }
 0x136   : > { %1380 = vmatprep.mubr.bf16.mxu0 %v647_v59  ;;  %v3214_v2 = vld [vmem:[%s4188_s25 + $0xe4] ss:$8 sps:$4 sm:$0xff]   ;;  %v3218_v3 = vld [vmem:[%s4188_s25 + $0x1d4] ss:$8 sps:$4 sm:$0xff]   ;;  %v3219_v4 = vld [vmem:[%s4188_s25 + $0xe0] ss:$8 sps:$4 sm:$0xff]  }
 0x137   : > { %1318 = vmatpush1.bf16.msra.mxu1 %v3165_v28  ;;  %v3216_v5 = vld [vmem:[%s4188_s25 + $0x1d0] ss:$8 sps:$4 sm:$0xff]   ;;  %v3220_v7 = vld [vmem:[%s4188_s25 + $0xf4] ss:$8 sps:$4 sm:$0xff]   ;;  %v3224_v8 = vld [vmem:[%s4188_s25 + $0x1e4] ss:$8 sps:$4 sm:$0xff]  }
 0x138   : > { %1355 = vmatpush1.bf16.msra.mxu0 %v3156_v24  ;;  %1319 = vmatprep.subr.bf16.mxu1 %v3166_v30  ;;  %v3225_v9 = vld [vmem:[%s4188_s25 + $0xf0] ss:$8 sps:$4 sm:$0xff]   ;;  %v3222_v11 = vld [vmem:[%s4188_s25 + $0x1e0] ss:$8 sps:$4 sm:$0xff]   ;;  %v3231_v12 = vld [vmem:[%s4188_s25 + $0x204] ss:$8 sps:$4 sm:$0xff]  }
 0x139   : > { %1356 = vmatprep.subr.bf16.mxu0 %v3164_v27  ;;  %v3228_v13 = vld [vmem:[%s4188_s25 + $0x1f4] ss:$8 sps:$4 sm:$0xff]   ;;  %v3226_v15 = vld [vmem:[%s4188_s25 + $0x1f0] ss:$8 sps:$4 sm:$0xff]   ;;  %v3229_v16 = vld [vmem:[%s4188_s25 + $0x200] ss:$8 sps:$4 sm:$0xff]  }
 0x13a   : > { %v639_v17 = vld [vmem:[%s4533_s17 + $0x10] sm:$0xff]  ;;  %v642_v23 = vld [vmem:[%s4533_s17 + $0x28] sm:$0xff] }
 0x13b   : > { %1320 = vmatpush1.bf16.msra.mxu1 %v3171_v33  ;;  %v3234_v18 = vld [vmem:[%s4188_s25 + $0x214] ss:$8 sps:$4 sm:$0xff]   ;;  %v3276_v19 = vld [vmem:[%s4188_s25 + $0x304] ss:$8 sps:$4 sm:$0xff]   ;;  %v646_v20 = vpack.c.bf16 %v639_v17, %v639_v17  ;;  %v3232_v21 = vld [vmem:[%s4188_s25 + $0x210] ss:$8 sps:$4 sm:$0xff]   ;;  %v649_v25 = vpack.c.bf16 %v642_v23, %v642_v23 }
 0x13c   : > { %1357 = vmatpush1.bf16.msra.mxu0 %v3162_v29  ;;  %1321 = vmatprep.subr.bf16.mxu1 %v3172_v34  ;;  %v3237_v22 = vld [vmem:[%s4188_s25 + $0x224] ss:$8 sps:$4 sm:$0xff]   ;;  %v3274_v24 = vld [vmem:[%s4188_s25 + $0x300] ss:$8 sps:$4 sm:$0xff]   ;;  %v3240_v27 = vld [vmem:[%s4188_s25 + $0x234] ss:$8 sps:$4 sm:$0xff]  }
 0x13d   : > { %1358 = vmatprep.subr.bf16.mxu0 %v3170_v31  ;;  %v3235_v26 = vld [vmem:[%s4188_s25 + $0x220] ss:$8 sps:$4 sm:$0xff]   ;;  %v3238_v29 = vld [vmem:[%s4188_s25 + $0x230] ss:$8 sps:$4 sm:$0xff]   ;;  %v3243_v30 = vld [vmem:[%s4188_s25 + $0x244] ss:$8 sps:$4 sm:$0xff]  }
 0x13e   : > { %v643_v28 = vld [vmem:[%s4533_s17 + $0x30] sm:$0xff]  ;;  %v3318_v17 = vld [vmem:[%s4202_s3 + $0xc4] ss:$16 sps:$4 sm:$0xff]  }
 0x13f   : > { %1322 = vmatpush1.bf16.msra.mxu1 %v3177_v36  ;;  %v650_v31 = vpack.c.bf16 %v643_v28, %v643_v28  ;;  %v3246_v33 = vld [vmem:[%s4188_s25 + $0x254] ss:$8 sps:$4 sm:$0xff]   ;;  %v3244_v34 = vld [vmem:[%s4188_s25 + $0x250] ss:$8 sps:$4 sm:$0xff]  }
 0x140   : > { %1359 = vmatpush1.bf16.msra.mxu0 %v3168_v32  ;;  %1323 = vmatprep.subr.bf16.mxu1 %v3178_v38  ;;  %v3241_v32 = vld [vmem:[%s4188_s25 + $0x240] ss:$8 sps:$4 sm:$0xff]   ;;  %v3252_v36 = vld [vmem:[%s4188_s25 + $0x274] ss:$8 sps:$4 sm:$0xff]   ;;  %v3255_v38 = vld [vmem:[%s4188_s25 + $0x284] ss:$8 sps:$4 sm:$0xff]  }
 0x141   : > { %1360 = vmatprep.subr.bf16.mxu0 %v3176_v35  ;;  %v3249_v35 = vld [vmem:[%s4188_s25 + $0x264] ss:$8 sps:$4 sm:$0xff]   ;;  %v3279_v52 = vld [vmem:[%s4188_s25 + $0x2f4] ss:$8 sps:$4 sm:$0xff]   ;;  %v3285_v59 = vld [vmem:[%s4202_s3 + $0xc] ss:$16 sps:$4 sm:$0xff]  }
 0x142   : > { %v3283_v58 = vld [vmem:[%s4202_s3 + $0x8] ss:$16 sps:$4 sm:$0xff]   ;;  %v3309_v10 = vld [vmem:[%s4202_s3 + $0x8c] ss:$16 sps:$4 sm:$0xff]   ;;  %v3322_v23 = vld [vmem:[%s4202_s3 + $0xe0] ss:$16 sps:$4 sm:$0xff]  }
 0x143   : > { %1324 = vmatpush1.bf16.msra.mxu1 %v3183_v41  ;;  %v3256_v41 = vld [vmem:[%s4188_s25 + $0x290] ss:$8 sps:$4 sm:$0xff]   ;;  %v3331_v28 = vld [vmem:[%s4202_s3 + $0x108] ss:$16 sps:$4 sm:$0xff]  }
 0x144   : > { %1361 = vmatpush1.bf16.msra.mxu0 %v3174_v37  ;;  %1325 = vmatprep.subr.bf16.mxu1 %v3184_v42  ;;  %v3250_v37 = vld [vmem:[%s4188_s25 + $0x270] ss:$8 sps:$4 sm:$0xff]   ;;  %v3261_v42 = vld [vmem:[%s4188_s25 + $0x2a4] ss:$8 sps:$4 sm:$0xff]  }
 0x145   : > { %1362 = vmatprep.subr.bf16.mxu0 %v3182_v39  ;;  %v3253_v39 = vld [vmem:[%s4188_s25 + $0x280] ss:$8 sps:$4 sm:$0xff]  }
 0x147   : > { %1326 = vmatpush1.bf16.msra.mxu1 %v3189_v44  ;;  %v3264_v44 = vld [vmem:[%s4188_s25 + $0x2b4] ss:$8 sps:$4 sm:$0xff]  }
 0x148   : > { %1363 = vmatpush1.bf16.msra.mxu0 %v3180_v40  ;;  %1327 = vmatprep.subr.bf16.mxu1 %v3190_v46  ;;  %v3258_v40 = vld [vmem:[%s4188_s25 + $0x294] ss:$8 sps:$4 sm:$0xff]   ;;  %v3267_v46 = vld [vmem:[%s4188_s25 + $0x2c4] ss:$8 sps:$4 sm:$0xff]  }
 0x149   : > { %1364 = vmatprep.subr.bf16.mxu0 %v3188_v43  ;;  %v3259_v43 = vld [vmem:[%s4188_s25 + $0x2a0] ss:$8 sps:$4 sm:$0xff]  }
 0x14b   : > { %1328 = vmatpush1.bf16.msra.mxu1 %v3195_v49  ;;  %v3268_v49 = vld [vmem:[%s4188_s25 + $0x2d0] ss:$8 sps:$4 sm:$0xff]  }
 0x14c   : > { %1365 = vmatpush1.bf16.msra.mxu0 %v3186_v45  ;;  %1329 = vmatprep.subr.bf16.mxu1 %v3196_v50  ;;  %v3262_v45 = vld [vmem:[%s4188_s25 + $0x2b0] ss:$8 sps:$4 sm:$0xff]   ;;  %v3273_v50 = vld [vmem:[%s4188_s25 + $0x2e4] ss:$8 sps:$4 sm:$0xff]  }
 0x14d   : > { %1366 = vmatprep.subr.bf16.mxu0 %v3194_v47  ;;  %v3265_v47 = vld [vmem:[%s4188_s25 + $0x2c0] ss:$8 sps:$4 sm:$0xff]  }
 0x14f   : > { %1330 = vmatpush1.bf16.msra.mxu1 %v3201_v54  ;;  %v641_v54 = vld [vmem:[%s4533_s17 + $0x20] sm:$0xff] }
 0x150   : > { %1367 = vmatpush1.bf16.msra.mxu0 %v3192_v48  ;;  %1331 = vmatprep.subr.bf16.mxu1 %v3202_v56  ;;  %v3270_v48 = vld [vmem:[%s4188_s25 + $0x2d4] ss:$8 sps:$4 sm:$0xff]   ;;  %v648_v55 = vpack.c.bf16 %v641_v54, %v641_v54 }
 0x151   : > { %1368 = vmatprep.subr.bf16.mxu0 %v3200_v51  ;;  %v3271_v51 = vld [vmem:[%s4188_s25 + $0x2e0] ss:$8 sps:$4 sm:$0xff]   ;;  %v3280_v56 = vld [vmem:[%s4202_s3] ss:$16 sps:$4 sm:$0xff]   ;;  %v3367_v54 = vld [vmem:[%s4202_s3 + $0x1c8] ss:$16 sps:$4 sm:$0xff]  }
 0x153   : > { %1332 = vmatpush1.bf16.msra.mxu1 %v3207_v60  ;;  %v3288_v60 = vld [vmem:[%s4202_s3 + $0x24] ss:$16 sps:$4 sm:$0xff]  }
 0x154   : > { %1369 = vmatpush1.bf16.msra.mxu0 %v3198_v53  ;;  %1333 = vmatprep.subr.bf16.mxu1 %v3208_v62  ;;  %v3277_v53 = vld [vmem:[%s4188_s25 + $0x2f0] ss:$8 sps:$4 sm:$0xff]   ;;  %v3286_v62 = vld [vmem:[%s4202_s3 + $0x20] ss:$16 sps:$4 sm:$0xff]  }
 0x155   : > { %1370 = vmatprep.subr.bf16.mxu0 %v3206_v57  ;;  %v3282_v57 = vld [vmem:[%s4202_s3 + $0x4] ss:$16 sps:$4 sm:$0xff]  }
 0x157   : > { %1334 = vmatpush1.bf16.msra.mxu1 %v3213_v0  ;;  %v3294_v0 = vld [vmem:[%s4202_s3 + $0x44] ss:$16 sps:$4 sm:$0xff]  }
 0x158   : > { %1371 = vmatpush1.bf16.msra.mxu0 %v3204_v61  ;;  %1335 = vmatprep.subr.bf16.mxu1 %v3214_v2  ;;  %v3291_v61 = vld [vmem:[%s4202_s3 + $0x2c] ss:$16 sps:$4 sm:$0xff]   ;;  %v3292_v2 = vld [vmem:[%s4202_s3 + $0x40] ss:$16 sps:$4 sm:$0xff]  }
 0x159   : > { %1372 = vmatprep.subr.bf16.mxu0 %v3212_v63  ;;  %v3289_v63 = vld [vmem:[%s4202_s3 + $0x28] ss:$16 sps:$4 sm:$0xff]  }
 0x15b   : > { %1336 = vmatpush1.bf16.msra.mxu1 %v3219_v4  ;;  %v3300_v4 = vld [vmem:[%s4202_s3 + $0x64] ss:$16 sps:$4 sm:$0xff]  }
 0x15c   : > { %1373 = vmatpush1.bf16.msra.mxu0 %v3210_v1  ;;  %1337 = vmatprep.subr.bf16.mxu1 %v3220_v7  ;;  %v3297_v1 = vld [vmem:[%s4202_s3 + $0x4c] ss:$16 sps:$4 sm:$0xff]   ;;  %v3298_v7 = vld [vmem:[%s4202_s3 + $0x60] ss:$16 sps:$4 sm:$0xff]  }
 0x15d   : > { %1374 = vmatprep.subr.bf16.mxu0 %v3218_v3  ;;  %v3295_v3 = vld [vmem:[%s4202_s3 + $0x48] ss:$16 sps:$4 sm:$0xff]  }
 0x15f   : > { %1338 = vmatpush1.bf16.msra.mxu1 %v3225_v9  ;;  %v3306_v9 = vld [vmem:[%s4202_s3 + $0x84] ss:$16 sps:$4 sm:$0xff]  }
 0x160   : > { %1375 = vmatpush1.bf16.msra.mxu0 %v3216_v5  ;;  %1389 = vmatprep.subr.bf16.mxu1 %v3231_v12  ;;  %v3303_v5 = vld [vmem:[%s4202_s3 + $0x6c] ss:$16 sps:$4 sm:$0xff]   ;;  %v3307_v12 = vld [vmem:[%s4202_s3 + $0x88] ss:$16 sps:$4 sm:$0xff]  }
 0x161   : > { %1376 = vmatprep.subr.bf16.mxu0 %v3224_v8  ;;  %v3301_v8 = vld [vmem:[%s4202_s3 + $0x68] ss:$16 sps:$4 sm:$0xff]  }
 0x162   : > { %1340 = vmatmul.mubr.bf16.vlgmr.msra.gmra.mrb[0].mxu1 %v644_v14  ;;  %v3315_v14 = vld [vmem:[%s4202_s3 + $0xac] ss:$16 sps:$4 sm:$0xff]  }
 0x163   : > { %1390 = vmatpush1.bf16.msra.mxu1 %v3229_v16  ;;  %1421 = vmatprep.mubr.bf16.mxu1 %v649_v25  ;;  %v3313_v16 = vld [vmem:[%s4202_s3 + $0xa8] ss:$16 sps:$4 sm:$0xff]   ;;  %v3330_v25 = vld [vmem:[%s4202_s3 + $0x104] ss:$16 sps:$4 sm:$0xff]  }
 0x164   : > { %1377 = vmatpush1.bf16.msra.mxu0 %v3222_v11  ;;  %1391 = vmatprep.subr.bf16.mxu1 %v3234_v18  ;;  %v3304_v11 = vld [vmem:[%s4202_s3 + $0x80] ss:$16 sps:$4 sm:$0xff]   ;;  %v3321_v18 = vld [vmem:[%s4202_s3 + $0xcc] ss:$16 sps:$4 sm:$0xff]  }
 0x165   : > { %1378 = vmatprep.subr.bf16.mxu0 %v3228_v13  ;;  %v3312_v13 = vld [vmem:[%s4202_s3 + $0xa4] ss:$16 sps:$4 sm:$0xff]  }
 0x167   : > { %1392 = vmatpush1.bf16.msra.mxu1 %v3232_v21  ;;  %v3324_v21 = vld [vmem:[%s4202_s3 + $0xe4] ss:$16 sps:$4 sm:$0xff]  }
 0x168   : > { %1379 = vmatpush1.bf16.msra.mxu0 %v3226_v15  ;;  %1393 = vmatprep.subr.bf16.mxu1 %v3237_v22  ;;  %v3310_v15 = vld [vmem:[%s4202_s3 + $0xa0] ss:$16 sps:$4 sm:$0xff]   ;;  %v3327_v22 = vld [vmem:[%s4202_s3 + $0xec] ss:$16 sps:$4 sm:$0xff]  }
 0x169   : > { %1430 = vmatprep.subr.bf16.mxu0 %v3276_v19  ;;  %v3316_v19 = vld [vmem:[%s4202_s3 + $0xc0] ss:$16 sps:$4 sm:$0xff]  }
 0x16b   : > { %1381 = vmatmul.mubr.bf16.vlgmr.msra.gmra.mrb[4].mxu0 %v646_v20  ;;  %1394 = vmatpush1.bf16.msra.mxu1 %v3235_v26  ;;  %v3319_v20 = vld [vmem:[%s4202_s3 + $0xc8] ss:$16 sps:$4 sm:$0xff]   ;;  %v3333_v26 = vld [vmem:[%s4202_s3 + $0x10c] ss:$16 sps:$4 sm:$0xff]  }
 0x16c   : > { %1431 = vmatpush1.bf16.msra.mxu0 %v3274_v24  ;;  %1462 = vmatprep.mubr.bf16.mxu0 %v3794_v6  ;;  %v3247_v6 = vld [vmem:[%s4188_s25 + $0x260] ss:$8 sps:$4 sm:$0xff]   ;;  %v3325_v24 = vld [vmem:[%s4202_s3 + $0xe8] ss:$16 sps:$4 sm:$0xff]   ;;  %s4534_s25 = sld [smem:[#allocation24_spill]] }
 0x16d   : > { %1395 = vmatprep.subr.bf16.mxu1 %v3240_v27  ;;  %1879 = vmatprep.subr.bf16.mxu0 %v3282_v57  ;;  %v3328_v27 = vld [vmem:[%s4202_s3 + $0x100] ss:$16 sps:$4 sm:$0xff]   ;;  %v3375_v57 = vld [vmem:[%s4202_s3 + $0x1ec] ss:$16 sps:$4 sm:$0xff]  }
 0x16f   : > { %1396 = vmatpush1.bf16.msra.mxu1 %v3238_v29  ;;  %v3336_v29 = vld [vmem:[%s4202_s3 + $0x124] ss:$16 sps:$4 sm:$0xff]  }
 0x170   : > { %1397 = vmatprep.subr.bf16.mxu1 %v3243_v30  ;;  %v3339_v30 = vld [vmem:[%s4202_s3 + $0x12c] ss:$16 sps:$4 sm:$0xff]  }
 0x172   : > { %p2931_p4 = scmp.ne.s32.totalorder %s4534_s25, 3 }
 0x173   : > { %2866 = vmatmul.mubr.msk.bf16.vlgmr.msra.gmra.mrb[8].mxu0 %vm1303_vm2, %v650_v31  ;;  %1398 = vmatpush1.bf16.msra.mxu1 %v3241_v32  ;;  %v3334_v31 = vld [vmem:[%s4202_s3 + $0x120] ss:$16 sps:$4 sm:$0xff]   ;;  %v3337_v32 = vld [vmem:[%s4202_s3 + $0x128] ss:$16 sps:$4 sm:$0xff]   ;;  %vm2528_vm3 = vcmask (!%p2931_p4), 7168   ;;  %s4535_s24 = sld [smem:[#allocation34_spill]] (!%p2931_p4) }
 0x174   : > { %1399 = vmatprep.subr.bf16.mxu1 %v3246_v33  ;;  %1880 = vmatpush1.bf16.msra.mxu0 %v3280_v56  ;;  %v3342_v33 = vld [vmem:[%s4202_s3 + $0x144] ss:$16 sps:$4 sm:$0xff]  }
 0x175   : > { %1881 = vmatprep.subr.bf16.mxu0 %v3288_v60  ;;  %v3372_v56 = vld [vmem:[%s4202_s3 + $0x1e4] ss:$16 sps:$4 sm:$0xff]  }
 0x177   : > { %1400 = vmatpush1.bf16.msra.mxu1 %v3244_v34  ;;  %v3345_v34 = vld [vmem:[%s4202_s3 + $0x14c] ss:$16 sps:$4 sm:$0xff]  }
 0x178   : > { %1401 = vmatprep.subr.bf16.mxu1 %v3249_v35  ;;  %1882 = vmatpush1.bf16.msra.mxu0 %v3286_v62  ;;  %v3340_v35 = vld [vmem:[%s4202_s3 + $0x140] ss:$16 sps:$4 sm:$0xff]  }
 0x179   : > { %1883 = vmatprep.subr.bf16.mxu0 %v3294_v0 }
 0x17b   : > { %1402 = vmatpush1.bf16.msra.mxu1 %v3247_v6  ;;  %v3343_v6 = vld [vmem:[%s4202_s3 + $0x148] ss:$16 sps:$4 sm:$0xff]  }
 0x17c   : > { %1403 = vmatprep.subr.bf16.mxu1 %v3252_v36  ;;  %1884 = vmatpush1.bf16.msra.mxu0 %v3292_v2  ;;  %v3348_v36 = vld [vmem:[%s4202_s3 + $0x164] ss:$16 sps:$4 sm:$0xff]  }
 0x17d   : > { %1885 = vmatprep.subr.bf16.mxu0 %v3300_v4 }
 0x17f   : > { %1404 = vmatpush1.bf16.msra.mxu1 %v3250_v37  ;;  %v3351_v37 = vld [vmem:[%s4202_s3 + $0x16c] ss:$16 sps:$4 sm:$0xff]  }
 0x180   : > { %1405 = vmatprep.subr.bf16.mxu1 %v3255_v38  ;;  %1886 = vmatpush1.bf16.msra.mxu0 %v3298_v7  ;;  %v3346_v38 = vld [vmem:[%s4202_s3 + $0x160] ss:$16 sps:$4 sm:$0xff]  }
 0x181   : > { %1887 = vmatprep.subr.bf16.mxu0 %v3306_v9 }
 0x183   : > { %1406 = vmatpush1.bf16.msra.mxu1 %v3253_v39  ;;  %v3349_v39 = vld [vmem:[%s4202_s3 + $0x168] ss:$16 sps:$4 sm:$0xff]  }
 0x184   : > { %1407 = vmatprep.subr.bf16.mxu1 %v3258_v40  ;;  %1888 = vmatpush1.bf16.msra.mxu0 %v3304_v11  ;;  %v3354_v40 = vld [vmem:[%s4202_s3 + $0x184] ss:$16 sps:$4 sm:$0xff]  }
 0x185   : > { %1889 = vmatprep.subr.bf16.mxu0 %v3312_v13  ;;  %v1473_v13 = vlaneseq }
 0x187   : > { %1408 = vmatpush1.bf16.msra.mxu1 %v3256_v41  ;;  %v3357_v41 = vld [vmem:[%s4202_s3 + $0x18c] ss:$16 sps:$4 sm:$0xff]  }
 0x188   : > { %1409 = vmatprep.subr.bf16.mxu1 %v3261_v42  ;;  %1890 = vmatpush1.bf16.msra.mxu0 %v3310_v15  ;;  %v3352_v42 = vld [vmem:[%s4202_s3 + $0x180] ss:$16 sps:$4 sm:$0xff]  }
 0x189   : > { %1891 = vmatprep.subr.bf16.mxu0 %v3318_v17 }
 0x18b   : > { %1410 = vmatpush1.bf16.msra.mxu1 %v3259_v43  ;;  %v3355_v43 = vld [vmem:[%s4202_s3 + $0x188] ss:$16 sps:$4 sm:$0xff]  }
 0x18c   : > { %1411 = vmatprep.subr.bf16.mxu1 %v3264_v44  ;;  %1892 = vmatpush1.bf16.msra.mxu0 %v3316_v19  ;;  %v3360_v44 = vld [vmem:[%s4202_s3 + $0x1a4] ss:$16 sps:$4 sm:$0xff]  }
 0x18d   : > { %1893 = vmatprep.subr.bf16.mxu0 %v3324_v21 }
 0x18f   : > { %1412 = vmatpush1.bf16.msra.mxu1 %v3262_v45  ;;  %v3363_v45 = vld [vmem:[%s4202_s3 + $0x1ac] ss:$16 sps:$4 sm:$0xff]  }
 0x190   : > { %1413 = vmatprep.subr.bf16.mxu1 %v3267_v46  ;;  %1894 = vmatpush1.bf16.msra.mxu0 %v3322_v23  ;;  %v3358_v46 = vld [vmem:[%s4202_s3 + $0x1a0] ss:$16 sps:$4 sm:$0xff]  }
 0x191   : > { %1895 = vmatprep.subr.bf16.mxu0 %v3330_v25 }
 0x193   : > { %1414 = vmatpush1.bf16.msra.mxu1 %v3265_v47  ;;  %v3361_v47 = vld [vmem:[%s4202_s3 + $0x1a8] ss:$16 sps:$4 sm:$0xff]  }
 0x194   : > { %1415 = vmatprep.subr.bf16.mxu1 %v3270_v48  ;;  %1896 = vmatpush1.bf16.msra.mxu0 %v3328_v27 }
 0x195   : > { %1897 = vmatprep.subr.bf16.mxu0 %v3336_v29 }
 0x197   : > { %1416 = vmatpush1.bf16.msra.mxu1 %v3268_v49 }
 0x198   : > { %1417 = vmatprep.subr.bf16.mxu1 %v3273_v50  ;;  %1898 = vmatpush1.bf16.msra.mxu0 %v3334_v31  ;;  %v3366_v50 = vld [vmem:[%s4202_s3 + $0x1c4] ss:$16 sps:$4 sm:$0xff]  }
 0x199   : > { %1899 = vmatprep.subr.bf16.mxu0 %v3342_v33 }
 0x19b   : > { %1418 = vmatpush1.bf16.msra.mxu1 %v3271_v51  ;;  %v3369_v51 = vld [vmem:[%s4202_s3 + $0x1cc] ss:$16 sps:$4 sm:$0xff]  }
 0x19c   : > { %1419 = vmatprep.subr.bf16.mxu1 %v3279_v52  ;;  %1900 = vmatpush1.bf16.msra.mxu0 %v3340_v35 }
 0x19d   : > { %1901 = vmatprep.subr.bf16.mxu0 %v3348_v36  ;;  %v1491_v36 = vld [vmem:[#allocation2 + $0x10] sm:$0xff] }
 0x19f   : > { %1420 = vmatpush1.bf16.msra.mxu1 %v3277_v53  ;;  %v3364_v53 = vld [vmem:[%s4202_s3 + $0x1c0] ss:$16 sps:$4 sm:$0xff]  }
 0x1a0   : > { %1920 = vmatprep.subr.bf16.mxu1 %v3285_v59  ;;  %1902 = vmatpush1.bf16.msra.mxu0 %v3346_v38  ;;  %v3373_v59 = vld [vmem:[%s4202_s3 + $0x1e8] ss:$16 sps:$4 sm:$0xff]  }
 0x1a1   : > { %1903 = vmatprep.subr.bf16.mxu0 %v3354_v40  ;;  %v1492_v38 = vld [vmem:[#allocation2 + $0x18] sm:$0xff] }
 0x1a2   : > { %1422 = vmatmul.mubr.bf16.vlgmr.msra.gmra.mrb[4].mxu1 %v648_v55 }
 0x1a3   : > { %1921 = vmatpush1.bf16.msra.mxu1 %v3283_v58  ;;  %v3370_v58 = vld [vmem:[%s4202_s3 + $0x1e0] ss:$16 sps:$4 sm:$0xff]  }
 0x1a4   : > { %1922 = vmatprep.subr.bf16.mxu1 %v3291_v61  ;;  %1904 = vmatpush1.bf16.msra.mxu0 %v3352_v42 }
 0x1a5   : > { %1905 = vmatprep.subr.bf16.mxu0 %v3360_v44 }
 0x1a7   : > { %1923 = vmatpush1.bf16.msra.mxu1 %v3289_v63 }
 0x1a8   : > { %1924 = vmatprep.subr.bf16.mxu1 %v3297_v1  ;;  %1906 = vmatpush1.bf16.msra.mxu0 %v3358_v46 }
 0x1a9   : > { %1907 = vmatprep.subr.bf16.mxu0 %v3366_v50 }
 0x1ab   : > { %1925 = vmatpush1.bf16.msra.mxu1 %v3295_v3 }
 0x1ac   : > { %1926 = vmatprep.subr.bf16.mxu1 %v3303_v5  ;;  %1908 = vmatpush1.bf16.msra.mxu0 %v3364_v53  ;;  %v3380_v53 = vld [vmem:[#allocation12] ss:$8 sps:$4 sm:$0xff] (!%p2931_p4)  }
 0x1ad   : > { %1909 = vmatprep.subr.bf16.mxu0 %v3372_v56  ;;  %v3384_v56 = vld [vmem:[#allocation12 + $0x114] ss:$8 sps:$4 sm:$0xff] (!%p2931_p4)  }
 0x1af   : > { %1927 = vmatpush1.bf16.msra.mxu1 %v3301_v8 }
 0x1b0   : > { %1928 = vmatprep.subr.bf16.mxu1 %v3309_v10  ;;  %1910 = vmatpush1.bf16.msra.mxu0 %v3370_v58  ;;  %v3387_v58 = vld [vmem:[#allocation12 + $0x110] ss:$8 sps:$4 sm:$0xff] (!%p2931_p4)  }
 0x1b3   : > { %1929 = vmatpush1.bf16.msra.mxu1 %v3307_v12 }
 0x1b4   : > { %1930 = vmatprep.subr.bf16.mxu1 %v3315_v14  ;;  %v4409_v14 = vshrl.u32 %v1473_v13, 7  ;;  %v3414_v13 = vld [vmem:[#allocation12 + $0x164] ss:$8 sps:$4 sm:$0xff] (!%p2931_p4)  }
 0x1b6   : > { %v4412_v15 = vsub.s32 0, %v4409_v14  ;;  %v4416_v17 = vsub.s32 1, %v4409_v14 }
 0x1b7   : > { %1931 = vmatpush1.bf16.msra.mxu1 %v3313_v16  ;;  %v1471_v16 = vld [vmem:[%s4200_s18] sm:$0x3] }
 0x1b8   : > { %1932 = vmatprep.subr.bf16.mxu1 %v3321_v18  ;;  %v1480_v23 = vrot.slane %v1471_v16, %v4416_v17 }
 0x1bb   : > { %1933 = vmatpush1.bf16.msra.mxu1 %v3319_v20  ;;  %v1476_v20 = vrot.slane %v1471_v16, %v4412_v15  ;;  %v3416_v16 = vld [vmem:[#allocation12 + $0x60] ss:$8 sps:$4 sm:$0xff] (!%p2931_p4)  }
 0x1bc   : > { %1934 = vmatprep.subr.bf16.mxu1 %v3327_v22 }
 0x1bf   : > { %1935 = vmatpush1.bf16.msra.mxu1 %v3325_v24 }
 0x1c0   : > { %1936 = vmatprep.subr.bf16.mxu1 %v3333_v26 }
 0x1c3   : > { %1937 = vmatpush1.bf16.msra.mxu1 %v3331_v28 }
 0x1c4   : > { %1938 = vmatprep.subr.bf16.mxu1 %v3339_v30 }
 0x1c7   : > { %1939 = vmatpush1.bf16.msra.mxu1 %v3337_v32 }
 0x1c8   : > { %1940 = vmatprep.subr.bf16.mxu1 %v3345_v34 }
 0x1cb   : > { %1941 = vmatpush1.bf16.msra.mxu1 %v3343_v6  ;;  %v1489_v6 = vld [vmem:[#allocation2] sm:$0xff] }
 0x1cc   : > { %1942 = vmatprep.subr.bf16.mxu1 %v3351_v37  ;;  %v1490_v37 = vld [vmem:[#allocation2 + $0x8] sm:$0xff] }
 0x1cf   : > { %1943 = vmatpush1.bf16.msra.mxu1 %v3349_v39 }
 0x1d0   : > { %1944 = vmatprep.subr.bf16.mxu1 %v3357_v41 }
 0x1d3   : > { %1945 = vmatpush1.bf16.msra.mxu1 %v3355_v43 }
 0x1d4   : > { %1946 = vmatprep.subr.bf16.mxu1 %v3363_v45 }
 0x1d7   : > { %1947 = vmatpush1.bf16.msra.mxu1 %v3361_v47 }
 0x1d8   : > { %1948 = vmatprep.subr.bf16.mxu1 %v3369_v51  ;;  %v3376_v51 = vld [vmem:[#allocation12 + $0x4] ss:$8 sps:$4 sm:$0xff] (!%p2931_p4)  }
 0x1db   : > { %1949 = vmatpush1.bf16.msra.mxu1 %v3367_v54  ;;  %v3381_v54 = vld [vmem:[#allocation12 + $0x100] ss:$8 sps:$4 sm:$0xff] (!%p2931_p4)  }
 0x1dc   : > { %1950 = vmatprep.subr.bf16.mxu1 %v3375_v57  ;;  %v3386_v57 = vld [vmem:[#allocation12 + $0x10] ss:$8 sps:$4 sm:$0xff] (!%p2931_p4)  }
 0x1df   : > { %1951 = vmatpush1.bf16.msra.mxu1 %v3373_v59  ;;  %v3388_v59 = vld [vmem:[#allocation12 + $0x24] ss:$8 sps:$4 sm:$0xff] (!%p2931_p4)  }
 0x1e0   : > { %2411 = vmatprep.subr.bf16.mxu1 (!%p2931_p4), %v3376_v51 }
 0x1fe   : > { %v806_v48 = vpop.f32.mrb[0].mxu0 }
 0x1ff   : > { %v808_v49 = vpop.f32.mrb[1].mxu0 }
 0x200   : > { %v810_v52 = vpop.f32.mrb[2].mxu0 }
 0x201   : > { %v811_v55 = vpop.f32.mrb[3].mxu0  ;;  %v3378_v52 = vld [vmem:[#allocation12 + $0x104] ss:$8 sps:$4 sm:$0xff] (!%p2931_p4)  }
 0x202   : > { %2452 = vmatprep.subr.bf16.mxu0 (!%p2931_p4), %v3378_v52  ;;  %v3382_v55 = vld [vmem:[#allocation12 + $0x14] ss:$8 sps:$4 sm:$0xff] (!%p2931_p4)  }
 0x235   : > { %v1341_v60 = vpop.f32.mrb[0].mxu1 }
 0x236   : > { %v1342_v61 = vadd.f32 %v1341_v60, %v806_v48  ;;  %v1343_v62 = vpop.f32.mrb[1].mxu1  ;;  %v3390_v60 = vld [vmem:[#allocation12 + $0x124] ss:$8 sps:$4 sm:$0xff] (!%p2931_p4)  }
 0x237   : > { %v1344_v63 = vadd.f32 %v1343_v62, %v808_v49  ;;  %v1345_v0 = vpop.f32.mrb[2].mxu1  ;;  %v3393_v62 = vld [vmem:[#allocation12 + $0x120] ss:$8 sps:$4 sm:$0xff] (!%p2931_p4)  }
 0x238   : > { %v1346_v1 = vpop.f32.mrb[3].mxu1  ;;  %v3396_v0 = vld [vmem:[#allocation12 + $0x134] ss:$8 sps:$4 sm:$0xff] (!%p2931_p4)  }
 0x239   : > { %v3398_v1 = vld [vmem:[#allocation12 + $0x30] ss:$8 sps:$4 sm:$0xff] (!%p2931_p4)  }
 0x23e   : > { %v1382_v2 = vpop.f32.mrb[4].mxu0 }
 0x23f   : > { %v1383_v3 = vadd.f32 %v1382_v2, %v1342_v61  ;;  %v1384_v4 = vpop.f32.mrb[5].mxu0  ;;  %v3392_v61 = vld [vmem:[#allocation12 + $0x20] ss:$8 sps:$4 sm:$0xff] (!%p2931_p4)   ;;  %v3399_v2 = vld [vmem:[#allocation12 + $0x130] ss:$8 sps:$4 sm:$0xff] (!%p2931_p4)  }
 0x240   : > { %v1385_v5 = vadd.f32 %v1384_v4, %v1344_v63  ;;  %v1386_v7 = vpop.f32.mrb[6].mxu0  ;;  %v3394_v63 = vld [vmem:[#allocation12 + $0x34] ss:$8 sps:$4 sm:$0xff] (!%p2931_p4)   ;;  %v3402_v4 = vld [vmem:[#allocation12 + $0x144] ss:$8 sps:$4 sm:$0xff] (!%p2931_p4)  }
 0x241   : > { %v1387_v8 = vpop.f32.mrb[7].mxu0  ;;  %v3405_v7 = vld [vmem:[#allocation12 + $0x140] ss:$8 sps:$4 sm:$0xff] (!%p2931_p4)  }
 0x242   : > { %v3406_v8 = vld [vmem:[#allocation12 + $0x54] ss:$8 sps:$4 sm:$0xff] (!%p2931_p4)  }
 0x246   : > { %v1464_v9 = vpop.f32.mrb[8].mxu0 }
 0x247   : > { %v1466_v10 = vpop.f32.mrb[9].mxu0 }
 0x248   : > { %v1468_v11 = vpop.f32.mrb[10].mxu0 }
 0x249   : > { %v1469_v12 = vpop.f32.mrb[11].mxu0  ;;  %v3411_v11 = vld [vmem:[#allocation12 + $0x150] ss:$8 sps:$4 sm:$0xff] (!%p2931_p4)  }
 0x24a   : > { %v3412_v12 = vld [vmem:[#allocation12 + $0x64] ss:$8 sps:$4 sm:$0xff] (!%p2931_p4)  }
 0x275   : > { %v1423_v18 = vpop.f32.mrb[4].mxu1 }
 0x276   : > { %v1424_v19 = vadd.f32 %v1423_v18, %v1383_v3  ;;  %v1425_v21 = vpop.f32.mrb[5].mxu1  ;;  %v3400_v3 = vld [vmem:[#allocation12 + $0x44] ss:$8 sps:$4 sm:$0xff] (!%p2931_p4)   ;;  %v3417_v18 = vld [vmem:[#allocation12 + $0x160] ss:$8 sps:$4 sm:$0xff] (!%p2931_p4)  }
 0x277   : > { %v1426_v22 = vadd.f32 %v1425_v21, %v1385_v5  ;;  %v1427_v24 = vpop.f32.mrb[6].mxu1  ;;  %v3404_v5 = vld [vmem:[#allocation12 + $0x40] ss:$8 sps:$4 sm:$0xff] (!%p2931_p4)   ;;  %v3422_v21 = vld [vmem:[#allocation12 + $0x70] ss:$8 sps:$4 sm:$0xff] (!%p2931_p4)  }
 0x278   : > { %v1465_v25 = vadd.f32 %v1464_v9, %v1424_v19  ;;  %v1428_v26 = vpop.f32.mrb[7].mxu1  ;;  %v3408_v9 = vld [vmem:[#allocation12 + $0x154] ss:$8 sps:$4 sm:$0xff] (!%p2931_p4)   ;;  %v3426_v24 = vld [vmem:[#allocation12 + $0x184] ss:$8 sps:$4 sm:$0xff] (!%p2931_p4)  }
 0x279   : > { %v1467_v27 = vadd.f32 %v1466_v10, %v1426_v22  ;;  %v3410_v10 = vld [vmem:[#allocation12 + $0x50] ss:$8 sps:$4 sm:$0xff] (!%p2931_p4)   ;;  %v3418_v19 = vld [vmem:[#allocation12 + $0x74] ss:$8 sps:$4 sm:$0xff] (!%p2931_p4)   ;;  %v3429_v26 = vld [vmem:[#allocation12 + $0x180] ss:$8 sps:$4 sm:$0xff] (!%p2931_p4)  }
 0x27a   : > { %v1483_v28 = vadd.f32 %v1476_v20, %v1465_v25  ;;  %v3420_v20 = vld [vmem:[#allocation12 + $0x174] ss:$8 sps:$4 sm:$0xff] (!%p2931_p4)   ;;  %v3423_v22 = vld [vmem:[#allocation12 + $0x170] ss:$8 sps:$4 sm:$0xff] (!%p2931_p4)   ;;  %v3428_v25 = vld [vmem:[#allocation12 + $0x80] ss:$8 sps:$4 sm:$0xff] (!%p2931_p4)  }
 0x27b   : > { %v1484_v29 = vadd.f32 %v1480_v23, %v1467_v27  ;;  %v3424_v23 = vld [vmem:[#allocation12 + $0x84] ss:$8 sps:$4 sm:$0xff] (!%p2931_p4)   ;;  %v3430_v27 = vld [vmem:[#allocation12 + $0x94] ss:$8 sps:$4 sm:$0xff] (!%p2931_p4)  }
 0x27c   : > { %v1485_v30 = vmul.f32 0.2, %v1483_v28 }
 0x27d   : > { %v1486_v31 = vmul.f32 0.2, %v1484_v29 }
 0x27e   : > { %v1487_v32 = vmax.f32 %v1483_v28, %v1485_v30  ;;  %v3432_v28 = vld [vmem:[#allocation12 + $0x194] ss:$8 sps:$4 sm:$0xff] (!%p2931_p4)   ;;  %v3435_v30 = vld [vmem:[#allocation12 + $0x190] ss:$8 sps:$4 sm:$0xff] (!%p2931_p4)  }
 0x27f   : > { %v1488_v33 = vmax.f32 %v1484_v29, %v1486_v31  ;;  %v3434_v29 = vld [vmem:[#allocation12 + $0x90] ss:$8 sps:$4 sm:$0xff] (!%p2931_p4)   ;;  %v3436_v31 = vld [vmem:[#allocation12 + $0xa4] ss:$8 sps:$4 sm:$0xff] (!%p2931_p4)  }
 0x280   : > { %v1493_v35 = vpack.c.bf16 %v1487_v32, %v1487_v32  ;;  %v3438_v32 = vld [vmem:[#allocation12 + $0x1a4] ss:$8 sps:$4 sm:$0xff] (!%p2931_p4)  }
 0x281   : > { %v1494_v34 = vpack.c.bf16 %v1488_v33, %v1488_v33  ;;  %v3440_v33 = vld [vmem:[#allocation12 + $0xa0] ss:$8 sps:$4 sm:$0xff] (!%p2931_p4)  }
 0x283   : > { %1911 = vmatprep.mubr.bf16.mxu0 %v1494_v34  ;;  %1952 = vmatprep.mubr.bf16.mxu1 %v1494_v34  ;;  %v3441_v34 = vld [vmem:[#allocation12 + $0x1a0] ss:$8 sps:$4 sm:$0xff] (!%p2931_p4)  }
 0x284   : > { %1912 = vmatmul.mubr.bf16.vlgmr.msra.gmra.mrb[12].mxu0 %v1493_v35  ;;  %1953 = vmatmul.mubr.bf16.vlgmr.msra.gmra.mrb[8].mxu1 %v1493_v35  ;;  %v3442_v35 = vld [vmem:[#allocation12 + $0xb4] ss:$8 sps:$4 sm:$0xff] (!%p2931_p4)  }
 0x285   : > { %2412 = vmatpush1.bf16.msra.mxu1 (!%p2931_p4), %v3380_v53  ;;  %2453 = vmatpush1.bf16.msra.mxu0 (!%p2931_p4), %v3381_v54 }
 0x286   : > { %2413 = vmatprep.subr.bf16.mxu1 (!%p2931_p4), %v3382_v55  ;;  %2454 = vmatprep.subr.bf16.mxu0 (!%p2931_p4), %v3384_v56  ;;  %v3454_v56 = vld [vmem:[#allocation12 + $0xd4] ss:$8 sps:$4 sm:$0xff] (!%p2931_p4)  }
 0x289   : > { %2414 = vmatpush1.bf16.msra.mxu1 (!%p2931_p4), %v3386_v57  ;;  %2455 = vmatpush1.bf16.msra.mxu0 (!%p2931_p4), %v3387_v58  ;;  %v3456_v57 = vld [vmem:[#allocation12 + $0x1d4] ss:$8 sps:$4 sm:$0xff] (!%p2931_p4)  }
 0x28a   : > { %2415 = vmatprep.subr.bf16.mxu1 (!%p2931_p4), %v3388_v59  ;;  %2456 = vmatprep.subr.bf16.mxu0 (!%p2931_p4), %v3390_v60 }
 0x28d   : > { %2416 = vmatpush1.bf16.msra.mxu1 (!%p2931_p4), %v3392_v61  ;;  %2457 = vmatpush1.bf16.msra.mxu0 (!%p2931_p4), %v3393_v62  ;;  %v3458_v62 = vld [vmem:[#allocation12 + $0xd0] ss:$8 sps:$4 sm:$0xff] (!%p2931_p4)  }
 0x28e   : > { %2417 = vmatprep.subr.bf16.mxu1 (!%p2931_p4), %v3394_v63  ;;  %2458 = vmatprep.subr.bf16.mxu0 (!%p2931_p4), %v3396_v0  ;;  %v3459_v63 = vld [vmem:[#allocation12 + $0x1d0] ss:$8 sps:$4 sm:$0xff] (!%p2931_p4)  }
 0x291   : > { %2418 = vmatpush1.bf16.msra.mxu1 (!%p2931_p4), %v3398_v1  ;;  %2459 = vmatpush1.bf16.msra.mxu0 (!%p2931_p4), %v3399_v2  ;;  %v3460_v2 = vld [vmem:[#allocation12 + $0xe4] ss:$8 sps:$4 sm:$0xff] (!%p2931_p4)  }
 0x292   : > { %2419 = vmatprep.subr.bf16.mxu1 (!%p2931_p4), %v3400_v3  ;;  %2460 = vmatprep.subr.bf16.mxu0 (!%p2931_p4), %v3402_v4  ;;  %v3462_v3 = vld [vmem:[#allocation12 + $0x1e4] ss:$8 sps:$4 sm:$0xff] (!%p2931_p4)  }
 0x295   : > { %2420 = vmatpush1.bf16.msra.mxu1 (!%p2931_p4), %v3404_v5  ;;  %2461 = vmatpush1.bf16.msra.mxu0 (!%p2931_p4), %v3405_v7  ;;  %v3464_v7 = vld [vmem:[#allocation12 + $0xe0] ss:$8 sps:$4 sm:$0xff] (!%p2931_p4)  }
 0x296   : > { %2421 = vmatprep.subr.bf16.mxu1 (!%p2931_p4), %v3406_v8  ;;  %2462 = vmatprep.subr.bf16.mxu0 (!%p2931_p4), %v3408_v9  ;;  %v3465_v8 = vld [vmem:[#allocation12 + $0x1e0] ss:$8 sps:$4 sm:$0xff] (!%p2931_p4)   ;;  %v3466_v9 = vld [vmem:[#allocation12 + $0xf4] ss:$8 sps:$4 sm:$0xff] (!%p2931_p4)  }
 0x299   : > { %2422 = vmatpush1.bf16.msra.mxu1 (!%p2931_p4), %v3410_v10  ;;  %2463 = vmatpush1.bf16.msra.mxu0 (!%p2931_p4), %v3411_v11  ;;  %v3468_v10 = vld [vmem:[#allocation12 + $0x1f4] ss:$8 sps:$4 sm:$0xff] (!%p2931_p4)  }
 0x29a   : > { %2423 = vmatprep.subr.bf16.mxu1 (!%p2931_p4), %v3412_v12  ;;  %2464 = vmatprep.subr.bf16.mxu0 (!%p2931_p4), %v3414_v13  ;;  %v3470_v13 = vld [vmem:[#allocation12 + $0xf0] ss:$8 sps:$4 sm:$0xff] (!%p2931_p4)  }
 0x29d   : > { %2424 = vmatpush1.bf16.msra.mxu1 (!%p2931_p4), %v3416_v16  ;;  %2465 = vmatpush1.bf16.msra.mxu0 (!%p2931_p4), %v3417_v18  ;;  %v3471_v16 = vld [vmem:[#allocation12 + $0x1f0] ss:$8 sps:$4 sm:$0xff] (!%p2931_p4)  }
 0x29e   : > { %2425 = vmatprep.subr.bf16.mxu1 (!%p2931_p4), %v3418_v19  ;;  %2466 = vmatprep.subr.bf16.mxu0 (!%p2931_p4), %v3420_v20  ;;  %v2079_v20 = vld [vmem:[#allocation14] sm:$0x3] (!%p2931_p4) }
 0x2a1   : > { %2426 = vmatpush1.bf16.msra.mxu1 (!%p2931_p4), %v3422_v21  ;;  %2467 = vmatpush1.bf16.msra.mxu0 (!%p2931_p4), %v3423_v22  ;;  %v2084_v21 = vrot.slane (!%p2931_p4), %v2079_v20, %v4412_v15  ;;  %v2088_v22 = vrot.slane (!%p2931_p4), %v2079_v20, %v4416_v17 }
 0x2a2   : > { %2427 = vmatprep.subr.bf16.mxu1 (!%p2931_p4), %v3424_v23  ;;  %2468 = vmatprep.subr.bf16.mxu0 (!%p2931_p4), %v3426_v24 }
 0x2a5   : > { %2428 = vmatpush1.bf16.msra.mxu1 (!%p2931_p4), %v3428_v25  ;;  %2469 = vmatpush1.bf16.msra.mxu0 (!%p2931_p4), %v3429_v26 }
 0x2a6   : > { %2429 = vmatprep.subr.bf16.mxu1 (!%p2931_p4), %v3430_v27  ;;  %2470 = vmatprep.subr.bf16.mxu0 (!%p2931_p4), %v3432_v28 }
 0x2a9   : > { %2430 = vmatpush1.bf16.msra.mxu1 (!%p2931_p4), %v3434_v29  ;;  %2471 = vmatpush1.bf16.msra.mxu0 (!%p2931_p4), %v3435_v30 }
 0x2aa   : > { %2431 = vmatprep.subr.bf16.mxu1 (!%p2931_p4), %v3436_v31  ;;  %2472 = vmatprep.subr.bf16.mxu0 (!%p2931_p4), %v3438_v32  ;;  %v2497_v31 = vld [vmem:[#allocation15] sm:$0x3] (!%p2931_p4) }
 0x2ad   : > { %2432 = vmatpush1.bf16.msra.mxu1 (!%p2931_p4), %v3440_v33  ;;  %2473 = vmatpush1.bf16.msra.mxu0 (!%p2931_p4), %v3441_v34 }
 0x2ae   : > { %2433 = vmatprep.subr.bf16.mxu1 (!%p2931_p4), %v3442_v35 }
 0x355   : > { %1972 = sbr.rel (%p2931_p4) target bundleno = 1275 (0x4fb), region = 104 }
 0x357   : > { %v1913_v39 = vpop.f32.mrb[12].mxu0  ;;  %v1954_v40 = vpop.f32.mrb[8].mxu1 }
 0x358   : > { %v1961_v41 = vadd.f32 %v1913_v39, %v1489_v6  ;;  %v1963_v42 = vadd.f32 %v1954_v40, %v1491_v36  ;;  %v1915_v43 = vpop.f32.mrb[13].mxu0  ;;  %v1956_v44 = vpop.f32.mrb[9].mxu1  ;;  %v1993_v6 = vsub.s32 (!%p2931_p4), 3, %v4409_v14  ;;  %v3444_v36 = vld [vmem:[#allocation12 + $0x1b4] ss:$8 sps:$4 sm:$0xff] (!%p2931_p4)   ;;  %v1989_v40 = vsub.s32 (!%p2931_p4), 2, %v4409_v14 }
 0x359   : > { %v1962_v45 = vadd.f32 %v1915_v43, %v1490_v37  ;;  %v1964_v46 = vadd.f32 %v1956_v44, %v1492_v38  ;;  %v1917_v47 = vpop.f32.mrb[14].mxu0  ;;  %v1958_v48 = vpop.f32.mrb[10].mxu1  ;;  %v1977_v38 = vld [vmem:[#allocation11] sm:$0xf] (!%p2931_p4)  ;;  %2474 = vmatprep.subr.bf16.mxu0 (!%p2931_p4), %v3444_v36  ;;  %v2502_v36 = vrot.slane (!%p2931_p4), %v2497_v31, %v4412_v15 }
 0x35a   : > { %1965 = vst [vmem:[#allocation2] sm:$0xff] %v1961_v41  ;;  %1967 = vst [vmem:[#allocation2 + $0x10] sm:$0xff] %v1963_v42  ;;  %v1918_v49 = vpop.f32.mrb[15].mxu0  ;;  %v1959_v50 = vpop.f32.mrb[11].mxu1  ;;  %v3446_v41 = vld [vmem:[#allocation12 + $0xb0] ss:$8 sps:$4 sm:$0xff] (!%p2931_p4)   ;;  %v1986_v43 = vrot.slane (!%p2931_p4), %v1977_v38, %v4416_v17  ;;  %v1994_v44 = vrot.slane (!%p2931_p4), %v1977_v38, %v1993_v6  ;;  %v1982_v51 = vrot.slane (!%p2931_p4), %v1977_v38, %v4412_v15 }
 0x35b   : > { %1966 = vst [vmem:[#allocation2 + $0x8] sm:$0xff] %v1962_v45  ;;  %1968 = vst [vmem:[#allocation2 + $0x18] sm:$0xff] %v1964_v46  ;;  %v3447_v42 = vld [vmem:[#allocation12 + $0x1b0] ss:$8 sps:$4 sm:$0xff] (!%p2931_p4)   ;;  %v3448_v45 = vld [vmem:[#allocation12 + $0xc4] ss:$8 sps:$4 sm:$0xff] (!%p2931_p4)   ;;  %v1990_v52 = vrot.slane (!%p2931_p4), %v1977_v38, %v1989_v40  ;;  %2434 = vmatpush1.bf16.msra.mxu1 (!%p2931_p4), %v3446_v41  ;;  %v2506_v38 = vrot.slane (!%p2931_p4), %v2497_v31, %v4416_v17 }
 0x35c   : > { %v3450_v46 = vld [vmem:[#allocation12 + $0x1c4] ss:$8 sps:$4 sm:$0xff]   ;;  %v3452_v49 = vld [vmem:[#allocation12 + $0xc0] ss:$8 sps:$4 sm:$0xff]   ;;  %2475 = vmatpush1.bf16.msra.mxu0 %v3447_v42  ;;  %2435 = vmatprep.subr.bf16.mxu1 %v3448_v45 }
 0x35d   : > { %v3453_v50 = vld [vmem:[#allocation12 + $0x1c0] ss:$8 sps:$4 sm:$0xff]   ;;  %2476 = vmatprep.subr.bf16.mxu0 %v3450_v46 }
 0x35f   : > { %2436 = vmatpush1.bf16.msra.mxu1 %v3452_v49 }
 0x360   : > { %2477 = vmatpush1.bf16.msra.mxu0 %v3453_v50  ;;  %2437 = vmatprep.subr.bf16.mxu1 %v3454_v56 }
 0x361   : > { %v1973_v54 = vld [vmem:[#allocation2] sm:$0xff]  ;;  %v1975_v55 = vld [vmem:[#allocation2 + $0x10] sm:$0xff]  ;;  %2478 = vmatprep.subr.bf16.mxu0 %v3456_v57 }
 0x362   : > { %v1974_v37 = vld [vmem:[#allocation2 + $0x8] sm:$0xff]  ;;  %v1976_v39 = vld [vmem:[#allocation2 + $0x18] sm:$0xff]  ;;  %v1999_v60 = vadd.f32 %v1982_v51, %v1973_v54  ;;  %v2001_v61 = vadd.f32 %v1990_v52, %v1975_v55 }
 0x363   : > { %v2000_v47 = vadd.f32 %v1986_v43, %v1974_v37  ;;  %v2002_v48 = vadd.f32 %v1994_v44, %v1976_v39  ;;  %2438 = vmatpush1.bf16.msra.mxu1 %v3458_v62  ;;  %v2996_v44 = vld [vmem:[#allocation3] ss:$0 sm:$0xff] }
 0x364   : > { %v2003_v4 = vmul.f32 0.2, %v1999_v60  ;;  %v2005_v5 = vmul.f32 0.2, %v2001_v61  ;;  %2479 = vmatpush1.bf16.msra.mxu0 %v3459_v63  ;;  %2439 = vmatprep.subr.bf16.mxu1 %v3460_v2 }
 0x365   : > { %v2004_v14 = vmul.f32 0.2, %v2000_v47  ;;  %v2006_v53 = vmul.f32 0.2, %v2002_v48  ;;  %2480 = vmatprep.subr.bf16.mxu0 %v3462_v3 }
 0x366   : > { %v2007_v11 = vmax.f32 %v1999_v60, %v2003_v4  ;;  %v2009_v12 = vmax.f32 %v2001_v61, %v2005_v5 }
 0x367   : > { %v2008_v58 = vmax.f32 %v2000_v47, %v2004_v14  ;;  %v2010_v59 = vmax.f32 %v2002_v48, %v2006_v53  ;;  %2440 = vmatpush1.bf16.msra.mxu1 %v3464_v7 }
 0x368   : > { %2481 = vmatpush1.bf16.msra.mxu0 %v3465_v8  ;;  %2441 = vmatprep.subr.bf16.mxu1 %v3466_v9  ;;  %v2011_v18 = vpack.c.bf16 %v2007_v11, %v2007_v11  ;;  %v2013_v19 = vpack.c.bf16 %v2009_v12, %v2009_v12 }
 0x369   : > { %v2012_v0 = vpack.c.bf16 %v2008_v58, %v2008_v58  ;;  %v2014_v1 = vpack.c.bf16 %v2010_v59, %v2010_v59  ;;  %2482 = vmatprep.subr.bf16.mxu0 %v3468_v10 }
 0x36b   : > { %2443 = vmatprep.mubr.bf16.mxu1 %v2012_v0  ;;  %2484 = vmatprep.mubr.bf16.mxu0 %v2014_v1 }
 0x36c   : > { %2442 = vmatpush1.bf16.msra.mxu1 %v3470_v13  ;;  %2483 = vmatpush1.bf16.msra.mxu0 %v3471_v16 }
 0x36f   : > { %2444 = vmatmul.mubr.bf16.vlgmr.msra.gmra.mrb[0].mxu1 %v2011_v18  ;;  %2485 = vmatmul.mubr.bf16.vlgmr.msra.gmra.mrb[0].mxu0 %v2013_v19 }
 0x442   : > { %v2445_v23 = vpop.f32.mrb[0].mxu1  ;;  %v2486_v24 = vpop.f32.mrb[0].mxu0 }
 0x443   : > { %v2446_v25 = vadd.f32 %v2445_v23, %v2084_v21  ;;  %v2447_v26 = vpop.f32.mrb[1].mxu1  ;;  %v2488_v27 = vpop.f32.mrb[1].mxu0 }
 0x444   : > { %v2448_v28 = vadd.f32 %v2447_v26, %v2088_v22  ;;  %v2449_v29 = vpop.f32.mrb[2].mxu1  ;;  %v2490_v30 = vpop.f32.mrb[2].mxu0 }
 0x445   : > { %v2487_v32 = vadd.f32 %v2486_v24, %v2446_v25  ;;  %v2450_v33 = vpop.f32.mrb[3].mxu1  ;;  %v2491_v34 = vpop.f32.mrb[3].mxu0 }
 0x446   : > { %v2489_v35 = vadd.f32 %v2488_v27, %v2448_v28 }
 0x447   : > { %v2493_v6 = vmul.f32 0.2, %v2487_v32 }
 0x448   : > { %v2494_v37 = vmul.f32 0.2, %v2489_v35 }
 0x449   : > { %v2495_v39 = vmax.f32 %v2487_v32, %v2493_v6 }
 0x44a   : > { %v2496_v40 = vmax.f32 %v2489_v35, %v2494_v37 }
 0x44b   : > { %v2509_v41 = vmul.f32 %v2502_v36, %v2495_v39 }
 0x44c   : > { %v2510_v42 = vmul.f32 %v2506_v38, %v2496_v40 }
 0x44e   : > { %v2511_v43 = vadd.f32 %v2510_v42, %v2509_v41 }
 0x450   : > { %2512 = vadd.xlane.f32.xlu0 %v2511_v43 }
 0x4dd   : > { %v2513_v45 = vpop.xlane.xlu0 %2512 }
 0x4de   : > { %v2521_v46 = vadd.f32 %v2996_v44, %v2513_v45 }
 0x4e0   : > { %v2997_v47 = vmul.f32 -1.442695, %v2521_v46 }
 0x4e2   : > { %3472 = vpow2.f32 %v2997_v47 }
 0x4ec   : > { %v3473_v48 = vpop.eup %3472 }
 0x4ed   : > { %v2525_v49 = vadd.f32 1.0, %v3473_v48 }
 0x4ef   : > { %3474 = vrcp.f32 %v2525_v49 }
 0x4f9   : > { %v3475_v50 = vpop.eup %3474 }
 0x4fa   : > { %2529 = vst.msk [vmem:[%s4535_s24] sm:$0xff] %vm2528_vm3, %v3475_v50 }
 0x4fb PF: > { %s34_s10 = sadd.s32 1, %s3778_s10   ;;  %s4536_s1 = sld [smem:[#allocation23_spill]] }
 0x4fc   : > { %p31_p12 = scmp.ge.s32.totalorder %s34_s10, 6   ;;  %s4537_s21 = sld [smem:[#allocation28_spill]] }
 0x4fd   : > { %s4538_s26 = sld [smem:[#allocation27_spill]]  ;;  %s4539_s19 = smov %s3762_s20 }
 0x4fe   : > { %s4541_s22 = smov %s3774_s23  ;;  %33 = sbr.rel (!%p31_p12) target bundleno = 17 (0x11), region = 171 }
 0x501   : > { %s4540_s20 = smov %s4536_s1 }
 0x503   : > { %s4542_s23 = smov %s4538_s26 }
 0x505   :  { %2549 = vsyncpa [#allocation5], 1 }
 0x506   :  { %2551 = vsyncpa [#allocation5 + $0x1], 1 }
 0x507   :  { %2552 = vsyncpa [#allocation7], 1 }
 0x508   :  { %2554 = vsyncpa [#allocation7 + $0x1], 1 }
 0x509   :  { %2555 = vsyncpa [#allocation10], 1 }
 0x50a   :  { %2557 = vsyncpa [#allocation10 + $0x1], 1 }
 0x50b   :  { %2558 = vsyncpa [#allocation13], 1 }
 0x50c   :  { %2559 = vsyncpa [#allocation16], 1 }

</bundles_post_ra>
